<compile_context>
chip_gen: v6e
topology: v6e:2x2x1
jax: 0.10.0
libtpu: 0.0.40
codegen_flags: <defaults>
</compile_context>

<pallas_src>
import functools

import jax
import jax.numpy as jnp
from jax.experimental import pallas as pl
from jax.experimental.pallas import tpu as pltpu


_PAD = 128  # lane-dense padding for all feature dims (all layer widths <= 128 here)


def _softplus(x):
    # torch.log(1 + torch.exp(x)), overflow-safe for large x.
    return jnp.where(x > 20.0, x, jnp.log1p(jnp.exp(jnp.minimum(x, 20.0))))


def _randnet_fused_kernel(x_ref, mu_ref, ro_ref, eps_ref, b_ref, o_ref, *,
                          num_layers):
    # x_ref:   (B_pad, 128)      activation, stays resident across layers
    # mu_ref:  (L, 128, 128)     pre-transposed mu   (in, out), zero padded
    # ro_ref:  (L, 128, 128)     pre-transposed ro
    # eps_ref: (L, 128, 128)     pre-transposed gaussian noise, zero padded
    # b_ref:   (L, 1, 128)       bias rows, zero padded
    h = x_ref[...]
    for l in range(num_layers):  # static unroll (3 layers)
        sd = _softplus(ro_ref[l])                     # EUP work, (128,128)
        w_t = eps_ref[l] * sd + mu_ref[l]             # sampled W.T
        h = jnp.dot(h, w_t, preferred_element_type=jnp.float32) + b_ref[l]
        if l != num_layers - 1:
            h = jnp.maximum(h, 0.0)                   # ReLU on hidden layers
    o_ref[...] = h.astype(o_ref.dtype)


def _pad2d(a, rows, cols):
    r, c = a.shape
    return jnp.pad(a, ((0, rows - r), (0, cols - c)))


def init_randnet_params(layers):
    """Deterministic init mirroring WULayer.__init__, stored pre-transposed (in, out)."""
    params = []
    for in_size, out_size in zip(layers[:-1], layers[1:]):
        mu_t = jnp.zeros((in_size, out_size), jnp.float32)
        ro_t = jnp.log(
            jnp.exp(1.5 * jnp.ones((in_size, out_size), jnp.float32)
                    / jnp.sqrt(jnp.float32(out_size))) - 1.0)
        b = jnp.zeros((out_size,), jnp.float32)
        params.append((mu_t, ro_t, b))
    return params


def pack_randnet_params(params):
    """One-time packing: zero-pad each (in,out) to (128,128) and stack over layers."""
    for mu_t, _, _ in params:
        assert mu_t.shape[0] <= _PAD and mu_t.shape[1] <= _PAD, \
            "this demo packs whole layers into 128x128 tiles"
    mu_s = jnp.stack([_pad2d(mu_t, _PAD, _PAD) for mu_t, _, _ in params])
    ro_s = jnp.stack([_pad2d(ro_t, _PAD, _PAD) for _, ro_t, _ in params])
    b_s = jnp.stack([_pad2d(b.reshape(1, -1), 1, _PAD) for _, _, b in params])
    out_size = params[-1][0].shape[1]
    return mu_s, ro_s, b_s, out_size


def sample_eps(params, key):
    """Fresh gaussian noise per layer, already in (in, out) layout (no transposes)."""
    keys = jax.random.split(key, len(params))
    return [jax.random.normal(k, mu_t.shape, dtype=mu_t.dtype)
            for (mu_t, _, _), k in zip(params, keys)]


def randnet_forward(x, packed_params, eps_list, out_func=lambda v: v):
    """RandNet.forward(x, new_weights=True) as a single fused Pallas call."""
    mu_s, ro_s, b_s, out_size = packed_params
    num_layers = mu_s.shape[0]
    eps_s = jnp.stack([_pad2d(e, _PAD, _PAD) for e in eps_list])

    batch = x.shape[0]
    b_pad = ((batch + 7) // 8) * 8  # sublane-align the batch dim
    x_pad = jnp.pad(x, ((0, b_pad - batch), (0, _PAD - x.shape[1])))

    kern = functools.partial(_randnet_fused_kernel, num_layers=num_layers)
    out = pl.pallas_call(
        kern,
        out_shape=jax.ShapeDtypeStruct((b_pad, _PAD), x.dtype),
        # Whole-array VMEM blocks: total residency is well under 1 MiB, so no
        # grid is needed; everything (weights, noise, activations) lives in VMEM
        # for the entire fused forward.
        in_specs=[pl.BlockSpec(memory_space=pltpu.MemorySpace.VMEM)] * 5,
        out_specs=pl.BlockSpec(memory_space=pltpu.MemorySpace.VMEM),
    )(x_pad, mu_s, ro_s, eps_s, b_s)

    return out_func(out[:batch, :out_size])


def _randnet_reference(x, params, eps_list, out_func=lambda v: v):
    """Pure-JAX reference (same eps draws, same softplus formulation)."""
    n = len(params)
    for i, ((mu_t, ro_t, b), eps_t) in enumerate(zip(params, eps_list)):
        sd = _softplus(ro_t)
        w_t = eps_t * sd + mu_t
        x = x @ w_t + b
        if i != n - 1:
            x = jnp.maximum(x, 0.0)
    return out_func(x)


if __name__ == "__main__":
    # RandNet(layers=[16, 32, 32, 8]) on a batch of 8 row vectors.
    layers = [16, 32, 32, 8]
    batch = 8

    root = jax.random.PRNGKey(0)
    k_x, k_w = jax.random.split(root)
    x = jax.random.normal(k_x, (batch, layers[0]), dtype=jnp.float32)

    params = init_randnet_params(layers)        # pre-transposed (in, out)
    packed = pack_randnet_params(params)        # padded + stacked, done once
    eps_list = sample_eps(params, k_w)          # fresh weights for this forward

    out = randnet_forward(x, packed, eps_list)
    out = jax.block_until_ready(out)

    ref = _randnet_reference(x, params, eps_list)
    assert out.shape == (batch, layers[-1])
    assert jnp.allclose(out, ref, atol=1e-5, rtol=1e-5)

    print("KERNEL_OK")
</pallas_src>

<mosaic_0001>
module attributes {stable_mosaic.version = 11 : i64} {
  func.func @_randnet_fused_kernel(%arg0: memref<8x128xf32, #tpu.memory_space<vmem>>, %arg1: memref<3x128x128xf32, #tpu.memory_space<vmem>>, %arg2: memref<3x128x128xf32, #tpu.memory_space<vmem>>, %arg3: memref<3x128x128xf32, #tpu.memory_space<vmem>>, %arg4: memref<3x1x128xf32, #tpu.memory_space<vmem>>, %arg5: memref<8x128xf32, #tpu.memory_space<vmem>>) attributes {dimension_semantics = [], scalar_prefetch = 0 : i64, scratch_operands = 0 : i64, tpu.core_type = #tpu.core_type<tc>} {
    %c0 = arith.constant 0 : index
    %c0_0 = arith.constant 0 : index
    %0 = vector.load %arg0[%c0, %c0_0] : memref<8x128xf32, #tpu.memory_space<vmem>>, vector<8x128xf32>
    %c0_1 = arith.constant 0 : index
    %c0_2 = arith.constant 0 : index
    %c0_3 = arith.constant 0 : index
    %1 = vector.load %arg2[%c0_1, %c0_2, %c0_3] : memref<3x128x128xf32, #tpu.memory_space<vmem>>, vector<1x128x128xf32>
    %2 = vector.shape_cast %1 : vector<1x128x128xf32> to vector<128x128xf32>
    %cst = arith.constant 2.000000e+01 : f32
    %3 = vector.broadcast %cst : f32 to vector<128x128xf32>
    %4 = arith.cmpf ogt, %2, %3 : vector<128x128xf32>
    %cst_4 = arith.constant 2.000000e+01 : f32
    %5 = vector.broadcast %cst_4 : f32 to vector<128x128xf32>
    %6 = arith.minimumf %2, %5 : vector<128x128xf32>
    %7 = math.exp %6 : vector<128x128xf32>
    %8 = math.log1p %7 : vector<128x128xf32>
    %9 = arith.select %4, %2, %8 : vector<128x128xi1>, vector<128x128xf32>
    %c0_5 = arith.constant 0 : index
    %c0_6 = arith.constant 0 : index
    %c0_7 = arith.constant 0 : index
    %10 = vector.load %arg3[%c0_5, %c0_6, %c0_7] : memref<3x128x128xf32, #tpu.memory_space<vmem>>, vector<1x128x128xf32>
    %11 = vector.shape_cast %10 : vector<1x128x128xf32> to vector<128x128xf32>
    %12 = arith.mulf %11, %9 : vector<128x128xf32>
    %c0_8 = arith.constant 0 : index
    %c0_9 = arith.constant 0 : index
    %c0_10 = arith.constant 0 : index
    %13 = vector.load %arg1[%c0_8, %c0_9, %c0_10] : memref<3x128x128xf32, #tpu.memory_space<vmem>>, vector<1x128x128xf32>
    %14 = vector.shape_cast %13 : vector<1x128x128xf32> to vector<128x128xf32>
    %15 = arith.addf %12, %14 : vector<128x128xf32>
    %cst_11 = arith.constant dense<0.000000e+00> : vector<8x128xf32>
    %16 = tpu.matmul %0, %15, %cst_11 {dimension_numbers = #tpu.dot_dimension_numbers<[1], [0], [0], [1], [0, 0, 1, 1], [], []>} : vector<8x128xf32>, vector<128x128xf32>, vector<8x128xf32> -> vector<8x128xf32>
    %c0_12 = arith.constant 0 : index
    %c0_13 = arith.constant 0 : index
    %c0_14 = arith.constant 0 : index
    %17 = vector.load %arg4[%c0_12, %c0_13, %c0_14] : memref<3x1x128xf32, #tpu.memory_space<vmem>>, vector<1x1x128xf32>
    %18 = vector.shape_cast %17 : vector<1x1x128xf32> to vector<1x128xf32>
    %19 = vector.broadcast %18 : vector<1x128xf32> to vector<8x128xf32>
    %20 = arith.addf %16, %19 : vector<8x128xf32>
    %cst_15 = arith.constant 0.000000e+00 : f32
    %21 = vector.broadcast %cst_15 : f32 to vector<8x128xf32>
    %22 = arith.maximumf %20, %21 : vector<8x128xf32>
    %c1 = arith.constant 1 : index
    %c0_16 = arith.constant 0 : index
    %c0_17 = arith.constant 0 : index
    %23 = vector.load %arg2[%c1, %c0_16, %c0_17] : memref<3x128x128xf32, #tpu.memory_space<vmem>>, vector<1x128x128xf32>
    %24 = vector.shape_cast %23 : vector<1x128x128xf32> to vector<128x128xf32>
    %cst_18 = arith.constant 2.000000e+01 : f32
    %25 = vector.broadcast %cst_18 : f32 to vector<128x128xf32>
    %26 = arith.cmpf ogt, %24, %25 : vector<128x128xf32>
    %cst_19 = arith.constant 2.000000e+01 : f32
    %27 = vector.broadcast %cst_19 : f32 to vector<128x128xf32>
    %28 = arith.minimumf %24, %27 : vector<128x128xf32>
    %29 = math.exp %28 : vector<128x128xf32>
    %30 = math.log1p %29 : vector<128x128xf32>
    %31 = arith.select %26, %24, %30 : vector<128x128xi1>, vector<128x128xf32>
    %c1_20 = arith.constant 1 : index
    %c0_21 = arith.constant 0 : index
    %c0_22 = arith.constant 0 : index
    %32 = vector.load %arg3[%c1_20, %c0_21, %c0_22] : memref<3x128x128xf32, #tpu.memory_space<vmem>>, vector<1x128x128xf32>
    %33 = vector.shape_cast %32 : vector<1x128x128xf32> to vector<128x128xf32>
    %34 = arith.mulf %33, %31 : vector<128x128xf32>
    %c1_23 = arith.constant 1 : index
    %c0_24 = arith.constant 0 : index
    %c0_25 = arith.constant 0 : index
    %35 = vector.load %arg1[%c1_23, %c0_24, %c0_25] : memref<3x128x128xf32, #tpu.memory_space<vmem>>, vector<1x128x128xf32>
    %36 = vector.shape_cast %35 : vector<1x128x128xf32> to vector<128x128xf32>
    %37 = arith.addf %34, %36 : vector<128x128xf32>
    %cst_26 = arith.constant dense<0.000000e+00> : vector<8x128xf32>
    %38 = tpu.matmul %22, %37, %cst_26 {dimension_numbers = #tpu.dot_dimension_numbers<[1], [0], [0], [1], [0, 0, 1, 1], [], []>} : vector<8x128xf32>, vector<128x128xf32>, vector<8x128xf32> -> vector<8x128xf32>
    %c1_27 = arith.constant 1 : index
    %c0_28 = arith.constant 0 : index
    %c0_29 = arith.constant 0 : index
    %39 = vector.load %arg4[%c1_27, %c0_28, %c0_29] : memref<3x1x128xf32, #tpu.memory_space<vmem>>, vector<1x1x128xf32>
    %40 = vector.shape_cast %39 : vector<1x1x128xf32> to vector<1x128xf32>
    %41 = vector.broadcast %40 : vector<1x128xf32> to vector<8x128xf32>
    %42 = arith.addf %38, %41 : vector<8x128xf32>
    %cst_30 = arith.constant 0.000000e+00 : f32
    %43 = vector.broadcast %cst_30 : f32 to vector<8x128xf32>
    %44 = arith.maximumf %42, %43 : vector<8x128xf32>
    %c2 = arith.constant 2 : index
    %c0_31 = arith.constant 0 : index
    %c0_32 = arith.constant 0 : index
    %45 = vector.load %arg2[%c2, %c0_31, %c0_32] : memref<3x128x128xf32, #tpu.memory_space<vmem>>, vector<1x128x128xf32>
    %46 = vector.shape_cast %45 : vector<1x128x128xf32> to vector<128x128xf32>
    %cst_33 = arith.constant 2.000000e+01 : f32
    %47 = vector.broadcast %cst_33 : f32 to vector<128x128xf32>
    %48 = arith.cmpf ogt, %46, %47 : vector<128x128xf32>
    %cst_34 = arith.constant 2.000000e+01 : f32
    %49 = vector.broadcast %cst_34 : f32 to vector<128x128xf32>
    %50 = arith.minimumf %46, %49 : vector<128x128xf32>
    %51 = math.exp %50 : vector<128x128xf32>
    %52 = math.log1p %51 : vector<128x128xf32>
    %53 = arith.select %48, %46, %52 : vector<128x128xi1>, vector<128x128xf32>
    %c2_35 = arith.constant 2 : index
    %c0_36 = arith.constant 0 : index
    %c0_37 = arith.constant 0 : index
    %54 = vector.load %arg3[%c2_35, %c0_36, %c0_37] : memref<3x128x128xf32, #tpu.memory_space<vmem>>, vector<1x128x128xf32>
    %55 = vector.shape_cast %54 : vector<1x128x128xf32> to vector<128x128xf32>
    %56 = arith.mulf %55, %53 : vector<128x128xf32>
    %c2_38 = arith.constant 2 : index
    %c0_39 = arith.constant 0 : index
    %c0_40 = arith.constant 0 : index
    %57 = vector.load %arg1[%c2_38, %c0_39, %c0_40] : memref<3x128x128xf32, #tpu.memory_space<vmem>>, vector<1x128x128xf32>
    %58 = vector.shape_cast %57 : vector<1x128x128xf32> to vector<128x128xf32>
    %59 = arith.addf %56, %58 : vector<128x128xf32>
    %cst_41 = arith.constant dense<0.000000e+00> : vector<8x128xf32>
    %60 = tpu.matmul %44, %59, %cst_41 {dimension_numbers = #tpu.dot_dimension_numbers<[1], [0], [0], [1], [0, 0, 1, 1], [], []>} : vector<8x128xf32>, vector<128x128xf32>, vector<8x128xf32> -> vector<8x128xf32>
    %c2_42 = arith.constant 2 : index
    %c0_43 = arith.constant 0 : index
    %c0_44 = arith.constant 0 : index
    %61 = vector.load %arg4[%c2_42, %c0_43, %c0_44] : memref<3x1x128xf32, #tpu.memory_space<vmem>>, vector<1x1x128xf32>
    %62 = vector.shape_cast %61 : vector<1x1x128xf32> to vector<1x128xf32>
    %63 = vector.broadcast %62 : vector<1x128xf32> to vector<8x128xf32>
    %64 = arith.addf %60, %63 : vector<8x128xf32>
    %c0_45 = arith.constant 0 : index
    %c0_46 = arith.constant 0 : index
    %65 = vector.load %arg5[%c0_45, %c0_46] : memref<8x128xf32, #tpu.memory_space<vmem>>, vector<8x128xf32>
    tpu.vector_store %arg5[%c0_45, %c0_46], %64 {strides = array<i32>} : memref<8x128xf32, #tpu.memory_space<vmem>>, vector<8x128xf32>,
    return
  }
}

</mosaic_0001>

<bundles_post_ra>
// kernel: tpu_custom_call.1
= control target key start
LH: loop header
LB: loop body
LE: loop exit
PB: predicated region body
PF: predicated region fallthrough
CT: control target
= control target key end

     0   :  { %10 = vsyncpa [#allocation3], 0  ;;  %s2552_s0 = inlined_call_operand.hbm [shape: f32[8,128], index: 0, kind: input, shape index: {}]   ;;  %s2553_s1 = inlined_call_operand.hbm [shape: f32[3,128,128], index: 1, kind: input, shape index: {}]   ;;  %s2554_s2 = inlined_call_operand.hbm [shape: f32[3,128,128], index: 2, kind: input, shape index: {}]   ;;  %s2555_s3 = inlined_call_operand.hbm [shape: f32[3,128,128], index: 3, kind: input, shape index: {}]   ;;  %s2556_s4 = inlined_call_operand.vmem [shape: f32[3,1,128], index: 4, kind: input, shape index: {}]   ;;  %s2557_s5 = inlined_call_operand.hbm [shape: f32[8,128], index: 5, kind: output, shape index: {}]  }
   0x1   :  { %11 = vsyncpa [#allocation6], 0 }
   0x2   :  { %12 = vsyncpa [#allocation9], 0 }
   0x3   :  { %13 = vsyncpa [#allocation4], 0  ;;  %s1716_s18 = smov [#allocation5]  }
   0x4   :  { %s29_s19 = sshll.u32 %s1716_s18, 4  ;;  %s30_s19 = int_to_ptr.vmem [resolvable:$true] %s29_s19 }
   0x5   :  { %s1616_s20 = scalar_lea.vmem %s30_s19, 6144  ;;  %p1621_p1 = scmp.lt.s32.totalorder %s30_s19, %s30_s19 }
   0x6   :  { %p1617_p0 = scmp.ne.s32.totalorder %s30_s19, %s1616_s20  ;;  %p1622_p2 = scmp.lt.s32.totalorder %s1616_s20, %s1616_s20 }
   0x8   :  { %p1623_p3 = por %p1622_p2, %p1621_p1 }
   0xa   :  { %p1624_p4 = pnand %p1623_p3, %p1617_p0 }
   0xc   :  { %1627 = shalt.err (!%p1624_p4)
}
   0xd   :  { %s1717_s21 = smov 128   ;;  %s1718_s22 = smov 8  }
   0xe   :  { %35 = dma.hbm_to_vmem [thread:$0]  %s2553_s1, 6144, %s30_s19, [#allocation6], %s1717_s21, %s1717_s21, %s1718_s22  }
   0xf   :  { %s1719_s25 = smov [#allocation2]   ;;  %s1720_s27 = smov [#allocation7]  }
  0x10   :  { %s20_s26 = sshll.u32 %s1719_s25, 4  ;;  %s41_s28 = sshll.u32 %s1720_s27, 4  ;;  %s21_s26 = int_to_ptr.vmem [resolvable:$true] %s20_s26  ;;  %s42_s28 = int_to_ptr.vmem [resolvable:$true] %s41_s28 }
  0x11   :  { %s1636_s29 = scalar_lea.vmem %s21_s26, 128  ;;  %p1641_p6 = scmp.lt.s32.totalorder %s21_s26, %s21_s26 }
  0x12   :  { %p1637_p5 = scmp.ne.s32.totalorder %s21_s26, %s1636_s29  ;;  %p1642_p7 = scmp.lt.s32.totalorder %s1636_s29, %s1636_s29 }
  0x14   :  { %p1643_p8 = por %p1642_p7, %p1641_p6 }
  0x16   :  { %p1644_p9 = pnand %p1643_p8, %p1637_p5 }
  0x18   :  { %1647 = shalt.err (!%p1644_p9)
}
  0x19   :  { %23 = dma.hbm_to_vmem [thread:$0]  %s2552_s0, 128, %s21_s26, [#allocation3]  }
  0x1a   :  { %s1656_s7 = scalar_lea.vmem %s42_s28, 6144  ;;  %p1661_p11 = scmp.lt.s32.totalorder %s42_s28, %s42_s28 }
  0x1b   :  { %p1657_p10 = scmp.ne.s32.totalorder %s42_s28, %s1656_s7  ;;  %p1662_p12 = scmp.lt.s32.totalorder %s1656_s7, %s1656_s7 }
  0x1d   :  { %p1663_p13 = por %p1662_p12, %p1661_p11 }
  0x1f   :  { %p1664_p0 = pnand %p1663_p13, %p1657_p10 }
  0x21   :  { %1667 = shalt.err (!%p1664_p0)
}
  0x22   :  { %47 = dma.hbm_to_vmem [thread:$0]  %s2554_s2, 6144, %s42_s28, [#allocation6], %s1717_s21, %s1717_s21, %s1718_s22  }
  0x23   :  { %s1721_s9 = smov [#allocation8]  }
  0x24   :  { %s53_s10 = sshll.u32 %s1721_s9, 4  ;;  %s54_s10 = int_to_ptr.vmem [resolvable:$true] %s53_s10 }
  0x25   :  { %s1676_s11 = scalar_lea.vmem %s54_s10, 6144  ;;  %p1681_p2 = scmp.lt.s32.totalorder %s54_s10, %s54_s10 }
  0x26   :  { %p1677_p1 = scmp.ne.s32.totalorder %s54_s10, %s1676_s11  ;;  %p1682_p3 = scmp.lt.s32.totalorder %s1676_s11, %s1676_s11 }
  0x28   :  { %p1683_p4 = por %p1682_p3, %p1681_p2 }
  0x2a   :  { %p1684_p5 = pnand %p1683_p4, %p1677_p1 }
  0x2c   :  { %1687 = shalt.err (!%p1684_p5)
}
  0x2d   :  { %59 = dma.hbm_to_vmem [thread:$0]  %s2555_s3, 6144, %s54_s10, [#allocation9], %s1717_s21, %s1717_s21, %s1718_s22  }
  0x2e   :  { %1708 = dma.done.wait [#allocation3], 128  }
  0x2f   :  { %1709 = vsyncadd [#allocation3], 4294967168 }
  0x30   :  { %1710 = dma.done.wait [#allocation6], 12288  }
  0x31   :  { %1711 = vsyncadd [#allocation6], 4294955008 }
  0x32   :  { %1712 = dma.done.wait [#allocation9], 6144  }
  0x33   :  { %1713 = vsyncadd [#allocation9], 4294961152  ;;  %v1722_v0 = vmov 0.0   ;;  %vm1723_vm0 = vmmov 0   ;;  %v1782_v1 = vld [vmem:[#allocation7 + $0x78] sm:$0xff]  ;;  %v1785_v3 = vld [vmem:[#allocation7 + $0x70] sm:$0xff] }
  0x34   :  { %1302 = vmatprep.subr.mxu0 %v1722_v0  ;;  %1334 = vmatprep.mubr.msk.f32.mxu0 %vm1723_vm0, %v1722_v0  ;;  %v122_v2 = vmin.f32 %v1782_v1, 20.0  ;;  %v121_v4 = vmin.f32 %v1785_v3, 20.0  ;;  %v1788_v5 = vld [vmem:[#allocation7 + $0x68] sm:$0xff]  ;;  %v1791_v8 = vld [vmem:[#allocation7 + $0x60] sm:$0xff]  ;;  %v1794_v11 = vld [vmem:[#allocation7 + $0x58] sm:$0xff]  ;;  %vm106_vm2 = vcmp.gt.f32.partialorder %v1782_v1, 20.0 }
  0x35   :  { %1337 = vmatprep.subr.mxu1 %v1722_v0  ;;  %1369 = vmatprep.mubr.msk.f32.mxu1 %vm1723_vm0, %v1722_v0  ;;  %v120_v7 = vmin.f32 %v1788_v5, 20.0  ;;  %v119_v10 = vmin.f32 %v1791_v8, 20.0  ;;  %v118_v13 = vmin.f32 %v1794_v11, 20.0  ;;  %v1797_v15 = vld [vmem:[#allocation7 + $0x50] sm:$0xff]  ;;  %v1800_v18 = vld [vmem:[#allocation7 + $0x48] sm:$0xff]  ;;  %v1803_v20 = vld [vmem:[#allocation7 + $0x40] sm:$0xff] }
  0x36   :  { %v153_v6 = vmul.f32 1.442695, %v122_v2  ;;  %v151_v9 = vmul.f32 1.442695, %v121_v4  ;;  %v117_v17 = vmin.f32 %v1797_v15, 20.0  ;;  %v116_v19 = vmin.f32 %v1800_v18, 20.0 }
  0x37   :  { %v149_v12 = vmul.f32 1.442695, %v120_v7  ;;  %v147_v14 = vmul.f32 1.442695, %v119_v10  ;;  %v145_v16 = vmul.f32 1.442695, %v118_v13 }
  0x38   :  { %1416 = vpow2.f32 %v153_v6  ;;  %v143_v21 = vmul.f32 1.442695, %v117_v17  ;;  %v115_v22 = vmin.f32 %v1803_v20, 20.0  ;;  %v1806_v23 = vld [vmem:[#allocation7 + $0x38] sm:$0xff]  ;;  %v141_v24 = vmul.f32 1.442695, %v116_v19 }
  0x39   :  { %1418 = vpow2.f32 %v151_v9  ;;  %v114_v25 = vmin.f32 %v1806_v23, 20.0  ;;  %v1809_v27 = vld [vmem:[#allocation7 + $0x30] sm:$0xff]  ;;  %v1812_v30 = vld [vmem:[#allocation7 + $0x28] sm:$0xff]  ;;  %v1815_v32 = vld [vmem:[#allocation7 + $0x20] sm:$0xff]  ;;  %vm105_vm4 = vcmp.gt.f32.partialorder %v1785_v3, 20.0  ;;  %vm104_vm6 = vcmp.gt.f32.partialorder %v1788_v5, 20.0 }
  0x3a   :  { %1420 = vpow2.f32 %v149_v12  ;;  %v139_v26 = vmul.f32 1.442695, %v115_v22  ;;  %v113_v29 = vmin.f32 %v1809_v27, 20.0  ;;  %v112_v31 = vmin.f32 %v1812_v30, 20.0  ;;  %v1818_v36 = vld [vmem:[#allocation7 + $0x18] sm:$0xff]  ;;  %v1821_v40 = vld [vmem:[#allocation7 + $0x10] sm:$0xff] }
  0x3b   :  { %1422 = vpow2.f32 %v147_v14  ;;  %v137_v28 = vmul.f32 1.442695, %v114_v25  ;;  %v111_v34 = vmin.f32 %v1815_v32, 20.0  ;;  %v110_v39 = vmin.f32 %v1818_v36, 20.0  ;;  %v1823_v47 = vld [vmem:[#allocation7 + $0x8] sm:$0xff]  ;;  %s1724_s17 = smov [#allocation10]  }
  0x3c   :  { %1424 = vpow2.f32 %v145_v16  ;;  %v135_v33 = vmul.f32 1.442695, %v113_v29  ;;  %v133_v35 = vmul.f32 1.442695, %v112_v31  ;;  %v109_v50 = vmin.f32 %v1821_v40, 20.0  ;;  %s1235_s18 = sshll.u32 %s1724_s17, 4  ;;  %s1236_s18 = int_to_ptr.vmem [resolvable:$true] %s1235_s18 }
  0x3d   :  { %1426 = vpow2.f32 %v143_v21  ;;  %v131_v37 = vmul.f32 1.442695, %v111_v34  ;;  %v129_v54 = vmul.f32 1.442695, %v110_v39  ;;  %v108_v57 = vmin.f32 %v1823_v47, 20.0  ;;  %s1688_s19 = scalar_lea.vmem %s1236_s18, 128  ;;  %p1693_p7 = scmp.lt.s32.totalorder %s1236_s18, %s1236_s18 }
  0x3e   :  { %1428 = vpow2.f32 %v141_v24  ;;  %v1829_v6 = vmul.f32 1.442695, %v109_v50  ;;  %vm103_vm8 = vcmp.gt.f32.partialorder %v1791_v8, 20.0  ;;  %vm102_vm9 = vcmp.gt.f32.partialorder %v1794_v11, 20.0  ;;  %p1689_p6 = scmp.ne.s32.totalorder %s1236_s18, %s1688_s19  ;;  %p1694_p8 = scmp.lt.s32.totalorder %s1688_s19, %s1688_s19 }
  0x3f   :  { %1430 = vpow2.f32 %v139_v26  ;;  %vm101_vm11 = vcmp.gt.f32.partialorder %v1797_v15, 20.0  ;;  %vm100_vm13 = vcmp.gt.f32.partialorder %v1800_v18, 20.0 }
  0x40   :  { %1432 = vpow2.f32 %v137_v28  ;;  %p1695_p9 = por %p1694_p8, %p1693_p7 }
  0x41   :  { %1434 = vpow2.f32 %v135_v33 }
  0x42   :  { %1436 = vpow2.f32 %v133_v35  ;;  %p1696_p10 = pnand %p1695_p9, %p1689_p6 }
  0x43   :  { %1438 = vpow2.f32 %v131_v37 }
  0x45   :  { %v1417_v38 = vpop.eup %1416 }
  0x46   :  { %v1419_v41 = vpop.eup %1418  ;;  %v290_v42 = vadd.f32 1.0, %v1417_v38  ;;  %v293_v44 = vmul.f32 -0.5, %v1417_v38  ;;  %v296_v52 = vand.u32 2147483647, %v1417_v38 }
  0x47   :  { %v1421_v43 = vpop.eup %1420  ;;  %v281_v45 = vadd.f32 1.0, %v1419_v41  ;;  %v284_v46 = vmul.f32 -0.5, %v1419_v41  ;;  %v287_v55 = vand.u32 2147483647, %v1419_v41 }
  0x48   :  { %v1423_v48 = vpop.eup %1422  ;;  %1440 = vlog2.f32 %v290_v42  ;;  %v272_v49 = vadd.f32 1.0, %v1421_v43  ;;  %v275_v53 = vmul.f32 -0.5, %v1421_v43  ;;  %v294_v59 = vadd.f32 1.0, %v293_v44 }
  0x49   :  { %v1425_v51 = vpop.eup %1424  ;;  %1442 = vlog2.f32 %v281_v45  ;;  %v263_v56 = vadd.f32 1.0, %v1423_v48  ;;  %v285_v60 = vadd.f32 1.0, %v284_v46  ;;  %v278_v61 = vand.u32 2147483647, %v1421_v43 }
  0x4a   :  { %1444 = vlog2.f32 %v272_v49  ;;  %v1427_v58 = vpop.eup %1426  ;;  %v266_v62 = vmul.f32 -0.5, %v1423_v48  ;;  %v254_v2 = vadd.f32 1.0, %v1425_v51  ;;  %v257_v4 = vmul.f32 -0.5, %v1425_v51 }
  0x4b   :  { %v1827_v63 = vpop.eup %1428  ;;  %1446 = vlog2.f32 %v263_v56  ;;  %vm1831_vm1 = vcmp.lt.f32.partialorder %v296_v52, 0.0004427343  ;;  %v276_v9 = vadd.f32 1.0, %v275_v53  ;;  %v269_v10 = vand.u32 2147483647, %v1423_v48 }
  0x4c   :  { %1448 = vpow2.f32 %v129_v54  ;;  %v1835_v12 = vpop.eup %1430  ;;  %vm1838_vm3 = vcmp.lt.f32.partialorder %v287_v55, 0.0004427343  ;;  %v267_v14 = vadd.f32 1.0, %v266_v62  ;;  %v245_v16 = vadd.f32 1.0, %v1427_v58 }
  0x4d   :  { %1450 = vlog2.f32 %v254_v2  ;;  %v248_v17 = vmul.f32 -0.5, %v1427_v58  ;;  %v295_v19 = vmul.f32 %v1417_v38, %v294_v59  ;;  %v1843_v21 = vmul.f32 %v1419_v41, %v285_v60  ;;  %v1850_v25 = vpop.eup %1432 }
  0x4e   :  { %vm1845_vm5 = vcmp.lt.f32.partialorder %v278_v61, 0.0004427343  ;;  %v236_v24 = vadd.f32 1.0, %v1827_v63  ;;  %v258_v26 = vadd.f32 1.0, %v257_v4  ;;  %v260_v28 = vand.u32 2147483647, %v1425_v51  ;;  %v1861_v35 = vpop.eup %1434 }
  0x4f   :  { %1452 = vlog2.f32 %v245_v16  ;;  %v239_v29 = vmul.f32 -0.5, %v1827_v63  ;;  %v1854_v31 = vmul.f32 %v1421_v43, %v276_v9  ;;  %vm1856_vm7 = vcmp.lt.f32.partialorder %v269_v10, 0.0004427343  ;;  %v1867_v42 = vpop.eup %1436  ;;  %v330_v4 = vld [vmem:[#allocation8 + $0x78] sm:$0xff]  ;;  %v329_v16 = vld [vmem:[#allocation8 + $0x70] sm:$0xff] }
  0x50   :  { %1454 = vlog2.f32 %v236_v24  ;;  %v227_v34 = vadd.f32 1.0, %v1835_v12  ;;  %v1864_v37 = vmul.f32 %v1423_v48, %v267_v14  ;;  %v249_v38 = vadd.f32 1.0, %v248_v17  ;;  %v1871_v46 = vpop.eup %1438  ;;  %v324_v48 = vld [vmem:[#allocation8 + $0x48] sm:$0xff] }
  0x51   :  { %v251_v39 = vand.u32 2147483647, %v1427_v58  ;;  %v230_v41 = vmul.f32 -0.5, %v1835_v12  ;;  %v240_v43 = vadd.f32 1.0, %v239_v29  ;;  %v242_v44 = vand.u32 2147483647, %v1827_v63 }
  0x52   :  { %1456 = vlog2.f32 %v227_v34  ;;  %v218_v45 = vadd.f32 1.0, %v1850_v25  ;;  %v1874_v49 = vmul.f32 %v1425_v51, %v258_v26  ;;  %vm1876_vm10 = vcmp.lt.f32.partialorder %v260_v28, 0.0004427343  ;;  %v362_v34 = vld [vmem:[#allocation5 + $0x78] sm:$0xff] }
  0x53   :  { %v233_v50 = vand.u32 2147483647, %v1835_v12  ;;  %v221_v52 = vmul.f32 -0.5, %v1850_v25  ;;  %v231_v54 = vadd.f32 1.0, %v230_v41  ;;  %v209_v55 = vadd.f32 1.0, %v1861_v35 }
  0x54   :  { %1458 = vlog2.f32 %v218_v45  ;;  %v212_v56 = vmul.f32 -0.5, %v1861_v35  ;;  %v1885_v51 = vmul.f32 %v1427_v58, %v249_v38  ;;  %vm1887_vm12 = vcmp.lt.f32.partialorder %v251_v39, 0.0004427343  ;;  %v354_v45 = vld [vmem:[#allocation5 + $0x38] sm:$0xff] }
  0x55   :  { %v1441_v53 = vpop.eup %1440  ;;  %v224_v62 = vand.u32 2147483647, %v1850_v25  ;;  %v1894_v10 = vmul.f32 %v1827_v63, %v240_v43  ;;  %vm1896_vm14 = vcmp.lt.f32.partialorder %v242_v44, 0.0004427343  ;;  %1460 = vlog2.f32 %v209_v55 }
  0x56   :  { %v1443_v59 = vpop.eup %1442  ;;  %v292_v60 = vmul.f32 0.6931472, %v1441_v53  ;;  %vm1902_vm15 = vcmp.lt.f32.partialorder %v233_v50, 0.0004427343  ;;  %v222_v26 = vadd.f32 1.0, %v221_v52  ;;  %v200_v28 = vadd.f32 1.0, %v1867_v42 }
  0x57   :  { %v1445_v2 = vpop.eup %1444  ;;  %v283_v9 = vmul.f32 0.6931472, %v1443_v59  ;;  %v1915_v38 = vmul.f32 %v1835_v12, %v231_v54  ;;  %v213_v39 = vadd.f32 1.0, %v212_v56  ;;  %v360_v53 = vld [vmem:[#allocation5 + $0x68] sm:$0xff]  ;;  %v327_v54 = vld [vmem:[#allocation8 + $0x60] sm:$0xff] }
  0x58   :  { %v298_v58 = vsel %vm1831_vm1, %v295_v19, %v292_v60  ;;  %v274_v17 = vmul.f32 0.6931472, %v1445_v2  ;;  %v1447_v29 = vpop.eup %1446  ;;  %v328_v19 = vld [vmem:[#allocation8 + $0x68] sm:$0xff]  ;;  %vm99_vm1 = vcmp.gt.f32.partialorder %v1803_v20, 20.0  ;;  %1462 = vlog2.f32 %v200_v28  ;;  %v326_v2 = vld [vmem:[#allocation8 + $0x58] sm:$0xff] }
  0x59   :  { %v314_v63 = vsel %vm106_vm2, %v1782_v1, %v298_v58  ;;  %v289_v7 = vsel %vm1838_vm3, %v1843_v21, %v283_v9  ;;  %v1917_v41 = vpop.eup %1448  ;;  %v361_v1 = vld [vmem:[#allocation5 + $0x70] sm:$0xff]  ;;  %v265_v21 = vmul.f32 0.6931472, %v1447_v29  ;;  %vm1925_vm2 = vcmp.lt.f32.partialorder %v224_v62, 0.0004427343  ;;  %v359_v62 = vld [vmem:[#allocation5 + $0x60] sm:$0xff] }
  0x5a   :  { %v346_v43 = vmul.f32 %v330_v4, %v314_v63  ;;  %v313_v44 = vsel %vm105_vm4, %v1785_v3, %v289_v7  ;;  %v280_v13 = vsel %vm1845_vm5, %v1854_v31, %v274_v17  ;;  %v1451_v12 = vpop.eup %1450  ;;  %vm98_vm3 = vcmp.gt.f32.partialorder %v1806_v23, 20.0 }
  0x5b   :  { %v345_v50 = vmul.f32 %v329_v16, %v313_v44  ;;  %v312_v52 = vsel %vm104_vm6, %v1788_v5, %v280_v13  ;;  %v203_v3 = vmul.f32 -0.5, %v1867_v42  ;;  %v271_v55 = vsel %vm1856_vm7, %v1864_v37, %v265_v21  ;;  %v357_v44 = vld [vmem:[#allocation5 + $0x50] sm:$0xff]  ;;  %v323_v21 = vld [vmem:[#allocation8 + $0x40] sm:$0xff] }
  0x5c   :  { %v378_v22 = vadd.f32 %v362_v34, %v346_v43  ;;  %v344_v31 = vmul.f32 %v328_v19, %v312_v52  ;;  %v256_v56 = vmul.f32 0.6931472, %v1451_v12  ;;  %v1453_v59 = vpop.eup %1452  ;;  %v311_v5 = vsel %vm103_vm8, %v1791_v8, %v271_v55 }
  0x5d   :  { %v377_v60 = vadd.f32 %v361_v1, %v345_v50  ;;  %v223_v4 = vmul.f32 %v1850_v25, %v222_v26  ;;  %vm97_vm4 = vcmp.gt.f32.partialorder %v1809_v27, 20.0  ;;  %v215_v9 = vand.u32 2147483647, %v1861_v35  ;;  %v1455_v58 = vpop.eup %1454  ;;  %v358_v25 = vld [vmem:[#allocation5 + $0x58] sm:$0xff]  ;;  %v325_v26 = vld [vmem:[#allocation8 + $0x50] sm:$0xff]  ;;  %v356_v50 = vld [vmem:[#allocation5 + $0x48] sm:$0xff] }
  0x5e   :  { %1303 = vmatpush3.msra.mxu0 %v378_v22  ;;  %v376_v16 = vadd.f32 %v360_v53, %v344_v31  ;;  %v343_v33 = vmul.f32 %v327_v54, %v311_v5  ;;  %v262_v37 = vsel %vm1876_vm10, %v1874_v49, %v256_v56  ;;  %v247_v17 = vmul.f32 0.6931472, %v1453_v59  ;;  %v321_v5 = vld [vmem:[#allocation8 + $0x30] sm:$0xff] }
  0x5f   :  { %1304 = vmatprep.subr.mxu0 %v1722_v0  ;;  %v310_v8 = vsel %vm102_vm9, %v1794_v11, %v262_v37  ;;  %v238_v28 = vmul.f32 0.6931472, %v1455_v58  ;;  %v214_v29 = vmul.f32 %v1861_v35, %v213_v39  ;;  %v191_v63 = vadd.f32 1.0, %v1871_v46  ;;  %v1457_v34 = vpop.eup %1456  ;;  %v1994_v58 = vld [vmem:[#allocation7] sm:$0xff] }
  0x60   :  { %1305 = vmatpush3.msra.mxu0 %v377_v60  ;;  %v375_v7 = vadd.f32 %v359_v62, %v343_v33  ;;  %v342_v19 = vmul.f32 %v326_v2, %v310_v8  ;;  %v253_v49 = vsel %vm1887_vm12, %v1885_v51, %v247_v17  ;;  %v204_v43 = vadd.f32 1.0, %v203_v3  ;;  %v322_v3 = vld [vmem:[#allocation8 + $0x38] sm:$0xff] }
  0x61   :  { %1306 = vmatprep.subr.mxu0 %v1722_v0  ;;  %v309_v11 = vsel %vm101_vm11, %v1797_v15, %v253_v49  ;;  %v244_v35 = vsel %vm1896_vm14, %v1894_v10, %v238_v28  ;;  %v229_v39 = vmul.f32 0.6931472, %v1457_v34  ;;  %1464 = vlog2.f32 %v191_v63  ;;  %v1459_v1 = vpop.eup %1458  ;;  %v2002_v17 = vld [vmem:[#allocation7 + $0xf8] sm:$0xff]  ;;  %v2007_v28 = vld [vmem:[#allocation7 + $0xf0] sm:$0xff]  ;;  %v2011_v63 = vld [vmem:[#allocation7 + $0xe8] sm:$0xff] }
  0x62   :  { %1307 = vmatpush3.msra.mxu0 %v376_v16  ;;  %v374_v13 = vadd.f32 %v358_v25, %v342_v19  ;;  %v341_v61 = vmul.f32 %v325_v26, %v309_v11  ;;  %v308_v51 = vsel %vm100_vm13, %v1800_v18, %v244_v35  ;;  %v206_v12 = vand.u32 2147483647, %v1867_v42  ;;  %v1461_v53 = vpop.eup %1460  ;;  %v353_v25 = vld [vmem:[#allocation5 + $0x30] sm:$0xff] }
  0x63   :  { %1308 = vmatprep.subr.mxu0 %v1722_v0  ;;  %v340_v15 = vmul.f32 %v324_v48, %v308_v51  ;;  %v235_v10 = vsel %vm1902_vm15, %v1915_v38, %v229_v39  ;;  %v220_v14 = vmul.f32 0.6931472, %v1459_v1  ;;  %v194_v52 = vmul.f32 -0.5, %v1871_v46  ;;  %v355_v38 = vld [vmem:[#allocation5 + $0x40] sm:$0xff]  ;;  %v2031_v51 = vld [vmem:[#allocation7 + $0xd8] sm:$0xff] }
  0x64   :  { %1309 = vmatpush3.msra.mxu0 %v375_v7  ;;  %v373_v54 = vadd.f32 %v357_v44, %v341_v61  ;;  %v307_v18 = vsel %vm99_vm1, %v1803_v20, %v235_v10  ;;  %vm1974_vm5 = vcmp.lt.f32.partialorder %v215_v9, 0.0004427343  ;;  %v182_v31 = vadd.f32 1.0, %v1917_v41  ;;  %v2022_v48 = vld [vmem:[#allocation7 + $0xe0] sm:$0xff]  ;;  %v352_v44 = vld [vmem:[#allocation5 + $0x28] sm:$0xff] }
  0x65   :  { %1310 = vmatprep.subr.mxu0 %v1722_v0  ;;  %v339_v24 = vmul.f32 %v323_v21, %v307_v18  ;;  %v226_v55 = vsel %vm1925_vm2, %v223_v4, %v220_v14  ;;  %v211_v56 = vmul.f32 0.6931472, %v1461_v53  ;;  %v205_v59 = vmul.f32 %v1867_v42, %v204_v43  ;;  %v1463_v16 = vpop.eup %1462  ;;  %v319_v53 = vld [vmem:[#allocation8 + $0x20] sm:$0xff] }
  0x66   :  { %1311 = vmatpush3.msra.mxu0 %v374_v13  ;;  %v372_v60 = vadd.f32 %v356_v50, %v340_v15  ;;  %v306_v20 = vsel %vm98_vm3, %v1806_v23, %v226_v55  ;;  %vm1986_vm6 = vcmp.lt.f32.partialorder %v206_v12, 0.0004427343  ;;  %1466 = vlog2.f32 %v182_v31  ;;  %v2034_v50 = vld [vmem:[#allocation7 + $0xd0] sm:$0xff]  ;;  %v351_v55 = vld [vmem:[#allocation5 + $0x20] sm:$0xff] }
  0x67   :  { %1312 = vmatprep.subr.mxu0 %v1722_v0  ;;  %v338_v2 = vmul.f32 %v322_v3, %v306_v20  ;;  %v217_v4 = vsel %vm1974_vm5, %v214_v29, %v211_v56  ;;  %v195_v42 = vadd.f32 1.0, %v194_v52  ;;  %v197_v9 = vand.u32 2147483647, %v1871_v46  ;;  %v320_v29 = vld [vmem:[#allocation8 + $0x28] sm:$0xff] }
  0x68   :  { %1313 = vmatpush3.msra.mxu0 %v373_v54  ;;  %v371_v23 = vadd.f32 %v355_v38, %v339_v24  ;;  %v305_v33 = vsel %vm97_vm4, %v1809_v27, %v217_v4  ;;  %1468 = vpow2.f32 %v1829_v6  ;;  %v125_v37 = vmul.f32 1.442695, %v108_v57  ;;  %v2038_v3 = vld [vmem:[#allocation7 + $0xc8] sm:$0xff]  ;;  %v2044_v24 = vld [vmem:[#allocation7 + $0xc0] sm:$0xff] }
  0x69   :  { %1314 = vmatprep.subr.mxu0 %v1722_v0  ;;  %v337_v8 = vmul.f32 %v321_v5, %v305_v33  ;;  %vm96_vm7 = vcmp.gt.f32.partialorder %v1812_v30, 20.0  ;;  %v202_v26 = vmul.f32 0.6931472, %v1463_v16  ;;  %vm95_vm8 = vcmp.gt.f32.partialorder %v1815_v32, 20.0 }
  0x6a   :  { %1315 = vmatpush3.msra.mxu0 %v372_v60  ;;  %v370_v27 = vadd.f32 %v354_v45, %v338_v2  ;;  %v185_v6 = vmul.f32 -0.5, %v1917_v41  ;;  %1470 = vpow2.f32 %v125_v37  ;;  %v107_v57 = vmin.f32 %v1994_v58, 20.0  ;;  %v2050_v60 = vld [vmem:[#allocation7 + $0xb8] sm:$0xff] }
  0x6b   :  { %1316 = vmatprep.subr.mxu0 %v1722_v0  ;;  %v208_v34 = vsel %vm1986_vm6, %v205_v59, %v202_v26  ;;  %v196_v7 = vmul.f32 %v1871_v46, %v195_v42  ;;  %vm2017_vm9 = vcmp.lt.f32.partialorder %v197_v9, 0.0004427343  ;;  %v505_v49 = vmin.f32 %v2002_v17, 20.0  ;;  %v318_v9 = vld [vmem:[#allocation8 + $0x18] sm:$0xff] }
  0x6c   :  { %1317 = vmatpush3.msra.mxu0 %v371_v23  ;;  %v369_v43 = vadd.f32 %v353_v25, %v337_v8  ;;  %v304_v11 = vsel %vm96_vm7, %v1812_v30, %v208_v34  ;;  %v123_v35 = vmul.f32 1.442695, %v107_v57  ;;  %v504_v39 = vmin.f32 %v2007_v28, 20.0  ;;  %v350_v26 = vld [vmem:[#allocation5 + $0x18] sm:$0xff] }
  0x6d   :  { %1318 = vmatprep.subr.mxu0 %v1722_v0  ;;  %v336_v46 = vmul.f32 %v320_v29, %v304_v11  ;;  %v188_v1 = vand.u32 2147483647, %v1917_v41  ;;  %v536_v13 = vmul.f32 1.442695, %v505_v49  ;;  %v503_v61 = vmin.f32 %v2011_v63, 20.0 }
  0x6e   :  { %v1465_v21 = vpop.eup %1464  ;;  %1319 = vmatpush3.msra.mxu0 %v370_v27  ;;  %v186_v12 = vadd.f32 1.0, %v185_v6  ;;  %1472 = vpow2.f32 %v123_v35  ;;  %v534_v15 = vmul.f32 1.442695, %v504_v39  ;;  %v502_v30 = vmin.f32 %v2022_v48, 20.0 }
  0x6f   :  { %1320 = vmatprep.subr.mxu0 %v1722_v0  ;;  %v368_v10 = vadd.f32 %v352_v44, %v336_v46  ;;  %v193_v14 = vmul.f32 0.6931472, %v1465_v21  ;;  %1474 = vpow2.f32 %v536_v13  ;;  %v532_v52 = vmul.f32 1.442695, %v503_v61 }
  0x70   :  { %1321 = vmatpush3.msra.mxu0 %v369_v43  ;;  %1476 = vpow2.f32 %v534_v15  ;;  %v530_v54 = vmul.f32 1.442695, %v502_v30  ;;  %v501_v18 = vmin.f32 %v2031_v51, 20.0  ;;  %v500_v31 = vmin.f32 %v2034_v50, 20.0 }
  0x71   :  { %1322 = vmatprep.subr.mxu0 %v1722_v0  ;;  %v199_v22 = vsel %vm2017_vm9, %v196_v7, %v193_v14  ;;  %1478 = vpow2.f32 %v532_v52  ;;  %v187_v56 = vmul.f32 %v1917_v41, %v186_v12  ;;  %vm2053_vm10 = vcmp.lt.f32.partialorder %v188_v1, 0.0004427343 }
  0x72   :  { %1323 = vmatpush3.msra.mxu0 %v368_v10  ;;  %v303_v38 = vsel %vm95_vm8, %v1815_v32, %v199_v22  ;;  %1480 = vpow2.f32 %v530_v54  ;;  %v528_v59 = vmul.f32 1.442695, %v501_v18  ;;  %v526_v2 = vmul.f32 1.442695, %v500_v31  ;;  %v2075_v54 = vld [vmem:[#allocation7 + $0xb0] sm:$0xff] }
  0x73   :  { %v1467_v20 = vpop.eup %1466  ;;  %1324 = vmatprep.subr.mxu0 %v1722_v0  ;;  %v335_v5 = vmul.f32 %v319_v53, %v303_v38  ;;  %v499_v45 = vmin.f32 %v2038_v3, 20.0  ;;  %vm94_vm11 = vcmp.gt.f32.partialorder %v1818_v36, 20.0  ;;  %v498_v41 = vmin.f32 %v2044_v24, 20.0 }
  0x74   :  { %v184_v32 = vmul.f32 0.6931472, %v1467_v20  ;;  %1482 = vpow2.f32 %v528_v59  ;;  %v497_v23 = vmin.f32 %v2050_v60, 20.0  ;;  %vm93_vm13 = vcmp.gt.f32.partialorder %v1821_v40, 20.0 }
  0x75   :  { %v1469_v4 = vpop.eup %1468  ;;  %v367_v42 = vadd.f32 %v351_v55, %v335_v5  ;;  %1484 = vpow2.f32 %v526_v2  ;;  %v524_v16 = vmul.f32 1.442695, %v499_v45  ;;  %v522_v27 = vmul.f32 1.442695, %v498_v41 }
  0x76   :  { %v190_v33 = vsel %vm2053_vm10, %v187_v56, %v184_v32  ;;  %v173_v37 = vadd.f32 1.0, %v1469_v4  ;;  %v176_v6 = vmul.f32 -0.5, %v1469_v4  ;;  %v179_v57 = vand.u32 2147483647, %v1469_v4 }
  0x77   :  { %v1471_v8 = vpop.eup %1470  ;;  %1325 = vmatpush3.msra.mxu0 %v367_v42  ;;  %v302_v25 = vsel %vm94_vm11, %v1818_v36, %v190_v33  ;;  %1486 = vpow2.f32 %v524_v16  ;;  %v520_v7 = vmul.f32 1.442695, %v497_v23  ;;  %vm92_vm14 = vcmp.gt.f32.partialorder %v1823_v47, 20.0 }
  0x78   :  { %1326 = vmatprep.subr.mxu0 %v1722_v0  ;;  %v334_v29 = vmul.f32 %v318_v9, %v302_v25  ;;  %1488 = vlog2.f32 %v173_v37  ;;  %v164_v34 = vadd.f32 1.0, %v1471_v8  ;;  %v167_v49 = vmul.f32 -0.5, %v1471_v8 }
  0x79   :  { %1490 = vpow2.f32 %v522_v27  ;;  %v177_v44 = vadd.f32 1.0, %v176_v6  ;;  %vm2066_vm12 = vcmp.lt.f32.partialorder %v179_v57, 0.0004427343  ;;  %v170_v1 = vand.u32 2147483647, %v1471_v8 }
  0x7a   :  { %v366_v19 = vadd.f32 %v350_v26, %v334_v29  ;;  %1492 = vlog2.f32 %v164_v34  ;;  %v168_v12 = vadd.f32 1.0, %v167_v49  ;;  %v496_v45 = vmin.f32 %v2075_v54, 20.0  ;;  %v74_v26 = vld [vmem:[#allocation2] sm:$0xff] }
  0x7b   :  { %v1473_v43 = vpop.eup %1472  ;;  %1494 = vpow2.f32 %v520_v7  ;;  %v178_v18 = vmul.f32 %v1469_v4, %v177_v44  ;;  %vm2079_vm15 = vcmp.lt.f32.partialorder %v170_v1, 0.0004427343  ;;  %vm91_vm2 = vcmp.gt.f32.partialorder %v1994_v58, 20.0 }
  0x7c   :  { %v1475_v11 = vpop.eup %1474  ;;  %1327 = vmatpush3.msra.mxu0 %v366_v19  ;;  %v155_v36 = vadd.f32 1.0, %v1473_v43  ;;  %v158_v35 = vmul.f32 -0.5, %v1473_v43  ;;  %v161_v15 = vand.u32 2147483647, %v1473_v43  ;;  %v169_v32 = vmul.f32 %v1471_v8, %v168_v12  ;;  %v317_v19 = vld [vmem:[#allocation8 + $0x10] sm:$0xff] }
  0x7d   :  { %v1477_v39 = vpop.eup %1476  ;;  %1328 = vmatprep.subr.mxu0 %v1722_v0  ;;  %v673_v13 = vadd.f32 1.0, %v1475_v11  ;;  %v676_v61 = vmul.f32 -0.5, %v1475_v11  ;;  %v679_v22 = vand.u32 2147483647, %v1475_v11  ;;  %vm489_vm4 = vcmp.gt.f32.partialorder %v2002_v17, 20.0 }
  0x7e   :  { %v2070_v21 = vpop.eup %1478  ;;  %1496 = vlog2.f32 %v155_v36  ;;  %v664_v30 = vadd.f32 1.0, %v1477_v39  ;;  %v159_v14 = vadd.f32 1.0, %v158_v35  ;;  %v667_v53 = vmul.f32 -0.5, %v1477_v39 }
  0x7f   :  { %v2073_v10 = vpop.eup %1480  ;;  %1498 = vlog2.f32 %v673_v13  ;;  %v677_v52 = vadd.f32 1.0, %v676_v61  ;;  %v655_v31 = vadd.f32 1.0, %v2070_v21  ;;  %v670_v59 = vand.u32 2147483647, %v1477_v39  ;;  %v349_v61 = vld [vmem:[#allocation5 + $0x10] sm:$0xff] }
  0x80   :  { %1500 = vlog2.f32 %v664_v30  ;;  %v668_v56 = vadd.f32 1.0, %v667_v53  ;;  %v658_v20 = vmul.f32 -0.5, %v2070_v21  ;;  %v646_v62 = vadd.f32 1.0, %v2073_v10 }
  0x81   :  { %v1483_v38 = vpop.eup %1482  ;;  %1502 = vlog2.f32 %v655_v31  ;;  %v649_v2 = vmul.f32 -0.5, %v2073_v10  ;;  %v2089_v41 = vmul.f32 %v1473_v43, %v159_v14  ;;  %vm2091_vm1 = vcmp.lt.f32.partialorder %v161_v15, 0.0004427343  ;;  %v2226_v31 = vld [vmem:[#allocation7 + $0xa0] sm:$0xff] }
  0x82   :  { %v2084_v5 = vpop.eup %1484  ;;  %v2095_v42 = vmul.f32 %v1475_v11, %v677_v52  ;;  %vm2100_vm3 = vcmp.lt.f32.partialorder %v679_v22, 0.0004427343  ;;  %v661_v23 = vand.u32 2147483647, %v2070_v21  ;;  %1504 = vlog2.f32 %v646_v62  ;;  %v316_v52 = vld [vmem:[#allocation8 + $0x8] sm:$0xff] }
  0x83   :  { %v637_v33 = vadd.f32 1.0, %v1483_v38  ;;  %v640_v37 = vmul.f32 -0.5, %v1483_v38  ;;  %v2106_v25 = vmul.f32 %v1477_v39, %v668_v56  ;;  %vm2108_vm5 = vcmp.lt.f32.partialorder %v670_v59, 0.0004427343 }
  0x84   :  { %v2097_v9 = vpop.eup %1486  ;;  %v659_v27 = vadd.f32 1.0, %v658_v20  ;;  %v628_v29 = vadd.f32 1.0, %v2084_v5  ;;  %vm488_vm6 = vcmp.gt.f32.partialorder %v2007_v28, 20.0  ;;  %v650_v57 = vadd.f32 1.0, %v649_v2  ;;  %v348_v2 = vld [vmem:[#allocation5 + $0x8] sm:$0xff] }
  0x85   :  { %v1489_v8 = vpop.eup %1488  ;;  %v652_v34 = vand.u32 2147483647, %v2073_v10  ;;  %1506 = vlog2.f32 %v637_v33  ;;  %v641_v49 = vadd.f32 1.0, %v640_v37  ;;  %v643_v43 = vand.u32 2147483647, %v1483_v38  ;;  %v315_v33 = vld [vmem:[#allocation8] sm:$0xff] }
  0x86   :  { %v175_v6 = vmul.f32 0.6931472, %v1489_v8  ;;  %v2115_v7 = vpop.eup %1490  ;;  %1508 = vlog2.f32 %v628_v29  ;;  %v631_v11 = vmul.f32 -0.5, %v2084_v5  ;;  %vm487_vm7 = vcmp.gt.f32.partialorder %v2011_v63, 20.0 }
  0x87   :  { %v1493_v44 = vpop.eup %1492  ;;  %vm2121_vm8 = vcmp.lt.f32.partialorder %v661_v23, 0.0004427343  ;;  %v634_v39 = vand.u32 2147483647, %v2084_v5  ;;  %v619_v1 = vadd.f32 1.0, %v2097_v9  ;;  %v2131_v15 = vmul.f32 %v2070_v21, %v659_v27  ;;  %v714_v27 = vld [vmem:[#allocation8 + $0xf8] sm:$0xff] }
  0x88   :  { %v181_v36 = vsel %vm2066_vm12, %v178_v18, %v175_v6  ;;  %v166_v12 = vmul.f32 0.6931472, %v1493_v44  ;;  %v622_v46 = vmul.f32 -0.5, %v2097_v9  ;;  %v2134_v30 = vpop.eup %1494  ;;  %vm486_vm9 = vcmp.gt.f32.partialorder %v2022_v48, 20.0  ;;  %v709_v18 = vld [vmem:[#allocation8 + $0xd0] sm:$0xff] }
  0x89   :  { %v301_v13 = vsel %vm93_vm13, %v1821_v40, %v181_v36  ;;  %v2138_v53 = vmul.f32 %v2073_v10, %v650_v57  ;;  %vm2140_vm10 = vcmp.lt.f32.partialorder %v652_v34, 0.0004427343  ;;  %1510 = vlog2.f32 %v619_v1 }
  0x8a   :  { %v333_v14 = vmul.f32 %v317_v19, %v301_v13  ;;  %v172_v21 = vsel %vm2079_vm15, %v169_v32, %v166_v12  ;;  %v2146_v22 = vmul.f32 %v1483_v38, %v641_v49  ;;  %vm2148_vm11 = vcmp.lt.f32.partialorder %v643_v43, 0.0004427343  ;;  %v347_v43 = vld [vmem:[#allocation5] sm:$0xff]  ;;  %v712_v12 = vld [vmem:[#allocation8 + $0xe8] sm:$0xff] }
  0x8b   :  { %v1497_v40 = vpop.eup %1496  ;;  %v632_v56 = vadd.f32 1.0, %v631_v11  ;;  %v610_v59 = vadd.f32 1.0, %v2115_v7  ;;  %v300_v62 = vsel %vm92_vm14, %v1823_v47, %v172_v21  ;;  %vm485_vm12 = vcmp.gt.f32.partialorder %v2031_v51, 20.0 }
  0x8c   :  { %v1499_v10 = vpop.eup %1498  ;;  %v365_v20 = vadd.f32 %v349_v61, %v333_v14  ;;  %v157_v23 = vmul.f32 0.6931472, %v1497_v40  ;;  %vm2157_vm13 = vcmp.lt.f32.partialorder %v634_v39, 0.0004427343  ;;  %v332_v32 = vmul.f32 %v316_v52, %v300_v62  ;;  %v747_v39 = vld [vmem:[#allocation5 + $0xf8] sm:$0xff]  ;;  %v746_v61 = vld [vmem:[#allocation5 + $0xf0] sm:$0xff] }
  0x8d   :  { %v1501_v55 = vpop.eup %1500  ;;  %v675_v37 = vmul.f32 0.6931472, %v1499_v10  ;;  %vm484_vm15 = vcmp.gt.f32.partialorder %v2034_v50, 20.0  ;;  %v623_v8 = vadd.f32 1.0, %v622_v46  ;;  %1512 = vlog2.f32 %v610_v59 }
  0x8e   :  { %1329 = vmatpush3.msra.mxu0 %v365_v20  ;;  %v163_v47 = vsel %vm2091_vm1, %v2089_v41, %v157_v23  ;;  %v666_v29 = vmul.f32 0.6931472, %v1501_v55  ;;  %v625_v6 = vand.u32 2147483647, %v2097_v9  ;;  %v613_v57 = vmul.f32 -0.5, %v2115_v7  ;;  %v1503_v34 = vpop.eup %1502  ;;  %v713_v41 = vld [vmem:[#allocation8 + $0xf0] sm:$0xff] }
  0x8f   :  { %1330 = vmatprep.subr.mxu0 %v1722_v0  ;;  %v364_v19 = vadd.f32 %v348_v2, %v332_v32  ;;  %v299_v49 = vsel %vm91_vm2, %v1994_v58, %v163_v47  ;;  %v681_v4 = vsel %vm2100_vm3, %v2095_v42, %v675_v37  ;;  %v601_v11 = vadd.f32 1.0, %v2134_v30  ;;  %v1505_v58 = vpop.eup %1504  ;;  %v710_v55 = vld [vmem:[#allocation8 + $0xd8] sm:$0xff] }
  0x90   :  { %v331_v44 = vmul.f32 %v315_v33, %v299_v49  ;;  %v697_v36 = vsel %vm489_vm4, %v2002_v17, %v681_v4  ;;  %v672_v1 = vsel %vm2108_vm5, %v2106_v25, %v666_v29  ;;  %v657_v13 = vmul.f32 0.6931472, %v1503_v34  ;;  %v2211_v29 = vld [vmem:[#allocation7 + $0xa8] sm:$0xff]  ;;  %v743_v34 = vld [vmem:[#allocation5 + $0xd8] sm:$0xff] }
  0x91   :  { %vm483_vm14 = vcmp.gt.f32.partialorder %v2038_v3, 20.0  ;;  %1331 = vmatpush3.msra.mxu0 %v364_v19  ;;  %v730_v16 = vmul.f32 %v714_v27, %v697_v36  ;;  %v696_v42 = vsel %vm488_vm6, %v2007_v28, %v672_v1  ;;  %v633_v46 = vmul.f32 %v2084_v5, %v632_v56  ;;  %v745_v5 = vld [vmem:[#allocation5 + $0xe8] sm:$0xff]  ;;  %v711_v56 = vld [vmem:[#allocation8 + $0xe0] sm:$0xff] }
  0x92   :  { %v2187_v17 = vmul.f32 %v2097_v9, %v623_v8  ;;  %1332 = vmatprep.subr.mxu0 %v1722_v0  ;;  %v363_v25 = vadd.f32 %v347_v43, %v331_v44  ;;  %v729_v14 = vmul.f32 %v713_v41, %v696_v42  ;;  %v663_v52 = vsel %vm2121_vm8, %v2131_v15, %v657_v13  ;;  %v1507_v21 = vpop.eup %1506  ;;  %v744_v15 = vld [vmem:[#allocation5 + $0xe0] sm:$0xff]  ;;  %v742_v9 = vld [vmem:[#allocation5 + $0xd0] sm:$0xff]  ;;  %v708_v4 = vld [vmem:[#allocation8 + $0xc8] sm:$0xff] }
  0x93   :  { %v648_v40 = vmul.f32 0.6931472, %v1505_v58  ;;  %v763_v59 = vadd.f32 %v747_v39, %v730_v16  ;;  %v695_v28 = vsel %vm487_vm7, %v2011_v63, %v663_v52  ;;  %vm482_vm1 = vcmp.gt.f32.partialorder %v2044_v24, 20.0  ;;  %v1509_v20 = vpop.eup %1508  ;;  %v741_v16 = vld [vmem:[#allocation5 + $0xc8] sm:$0xff] }
  0x94   :  { %v614_v10 = vadd.f32 1.0, %v613_v57  ;;  %1514 = vlog2.f32 %v601_v11  ;;  %1333 = vmatpush3.msra.mxu0 %v363_v25  ;;  %v762_v62 = vadd.f32 %v746_v61, %v729_v14  ;;  %v728_v2 = vmul.f32 %v712_v12, %v695_v28  ;;  %v2239_v11 = vld [vmem:[#allocation7 + $0x98] sm:$0xff] }
  0x95   :  { %v654_v35 = vsel %vm2140_vm10, %v2138_v53, %v648_v40  ;;  %v639_v23 = vmul.f32 0.6931472, %v1507_v21  ;;  %1335 = vmatmul.mubr.f32.vlgmr.msra.gmra.mxu0 %v74_v26  ;;  %1338 = vmatpush3.msra.mxu1 %v763_v59  ;;  %v630_v32 = vmul.f32 0.6931472, %v1509_v20  ;;  %v616_v33 = vand.u32 2147483647, %v2115_v7 }
  0x96   :  { %v694_v63 = vsel %vm486_vm9, %v2022_v48, %v654_v35  ;;  %v604_v37 = vmul.f32 -0.5, %v2134_v30  ;;  %1339 = vmatprep.subr.mxu1 %v1722_v0  ;;  %v761_v8 = vadd.f32 %v745_v5, %v728_v2  ;;  %v518_v27 = vmul.f32 1.442695, %v496_v45  ;;  %1372 = vmatprep.subr.mxu0 %v1722_v0  ;;  %v1511_v48 = vpop.eup %1510  ;;  %v740_v40 = vld [vmem:[#allocation5 + $0xc0] sm:$0xff] }
  0x97   :  { %v727_v47 = vmul.f32 %v711_v56, %v694_v63  ;;  %v645_v53 = vsel %vm2148_vm11, %v2146_v22, %v639_v23  ;;  %1340 = vmatpush3.msra.mxu1 %v762_v62  ;;  %v636_v19 = vsel %vm2157_vm13, %v633_v46, %v630_v32  ;;  %vm2221_vm2 = vcmp.lt.f32.partialorder %v625_v6, 0.0004427343  ;;  %1404 = vmatprep.mubr.msk.f32.mxu0 %vm1723_vm0, %v1722_v0  ;;  %v707_v46 = vld [vmem:[#allocation8 + $0xc0] sm:$0xff] }
  0x98   :  { %v693_v57 = vsel %vm485_vm12, %v2031_v51, %v645_v53  ;;  %v615_v45 = vmul.f32 %v2115_v7, %v614_v10  ;;  %1341 = vmatprep.subr.mxu1 %v1722_v0  ;;  %v692_v38 = vsel %vm484_vm15, %v2034_v50, %v636_v19  ;;  %v621_v6 = vmul.f32 0.6931472, %v1511_v48  ;;  %v2271_v48 = vld [vmem:[#allocation7 + $0x80] sm:$0xff] }
  0x99   :  { %v760_v51 = vadd.f32 %v744_v15, %v727_v47  ;;  %v726_v49 = vmul.f32 %v710_v55, %v693_v57  ;;  %1342 = vmatpush3.msra.mxu1 %v761_v8  ;;  %v725_v43 = vmul.f32 %v709_v18, %v692_v38  ;;  %vm2234_vm3 = vcmp.lt.f32.partialorder %v616_v33, 0.0004427343  ;;  %v2265_v55 = vld [vmem:[#allocation7 + $0x90] sm:$0xff]  ;;  %v2268_v47 = vld [vmem:[#allocation7 + $0x88] sm:$0xff] }
  0x9a   :  { %1516 = vpow2.f32 %v518_v27  ;;  %v495_v41 = vmin.f32 %v2211_v29, 20.0  ;;  %v1513_v44 = vpop.eup %1512  ;;  %1343 = vmatprep.subr.mxu1 %v1722_v0  ;;  %v627_v50 = vsel %vm2221_vm2, %v2187_v17, %v621_v6  ;;  %v605_v39 = vadd.f32 1.0, %v604_v37 }
  0x9b   :  { %v759_v36 = vadd.f32 %v743_v34, %v726_v49  ;;  %v494_v1 = vmin.f32 %v2226_v31, 20.0  ;;  %1344 = vmatpush3.msra.mxu1 %v760_v51  ;;  %v758_v13 = vadd.f32 %v742_v9, %v725_v43  ;;  %v691_v58 = vsel %vm483_vm14, %v2038_v3, %v627_v50  ;;  %v705_v50 = vld [vmem:[#allocation8 + $0xb0] sm:$0xff] }
  0x9c   :  { %v612_v42 = vmul.f32 0.6931472, %v1513_v44  ;;  %v516_v61 = vmul.f32 1.442695, %v495_v41  ;;  %1345 = vmatprep.subr.mxu1 %v1722_v0  ;;  %v724_v12 = vmul.f32 %v708_v4, %v691_v58  ;;  %v607_v25 = vand.u32 2147483647, %v2134_v30 }
  0x9d   :  { %v514_v26 = vmul.f32 1.442695, %v494_v1  ;;  %v493_v17 = vmin.f32 %v2239_v11, 20.0  ;;  %1346 = vmatpush3.msra.mxu1 %v759_v36  ;;  %v606_v28 = vmul.f32 %v2134_v30, %v605_v39  ;;  %vm481_vm4 = vcmp.gt.f32.partialorder %v2050_v60, 20.0  ;;  %v739_v30 = vld [vmem:[#allocation5 + $0xb8] sm:$0xff] }
  0x9e   :  { %v618_v14 = vsel %vm2234_vm3, %v615_v45, %v612_v42  ;;  %1518 = vpow2.f32 %v516_v61  ;;  %1347 = vmatprep.subr.mxu1 %v1722_v0  ;;  %v757_v3 = vadd.f32 %v741_v16, %v724_v12  ;;  %vm608_vm0 = vcmp.lt.f32.partialorder %v607_v25, 0.0004427343  ;;  %v738_v61 = vld [vmem:[#allocation5 + $0xb0] sm:$0xff] }
  0x9f   :  { %v690_v52 = vsel %vm482_vm1, %v2044_v24, %v618_v14  ;;  %1520 = vpow2.f32 %v514_v26  ;;  %v512_v21 = vmul.f32 1.442695, %v493_v17  ;;  %1348 = vmatpush3.msra.mxu1 %v758_v13  ;;  %v706_v24 = vld [vmem:[#allocation8 + $0xb8] sm:$0xff]  ;;  %v492_v8 = vmin.f32 %v2265_v55, 20.0 }
  0xa0   :  { %v723_v59 = vmul.f32 %v707_v46, %v690_v52  ;;  %1349 = vmatprep.subr.mxu1 %v1722_v0  ;;  %v491_v18 = vmin.f32 %v2268_v47, 20.0  ;;  %v490_v19 = vmin.f32 %v2271_v48, 20.0  ;;  %vm480_vm6 = vcmp.gt.f32.partialorder %v2075_v54, 20.0 }
  0xa1   :  { %v1515_v5 = vpop.eup %1514  ;;  %1522 = vpow2.f32 %v512_v21  ;;  %1350 = vmatpush3.msra.mxu1 %v757_v3  ;;  %v510_v57 = vmul.f32 1.442695, %v492_v8  ;;  %vm479_vm8 = vcmp.gt.f32.partialorder %v2211_v29, 20.0  ;;  %v704_v3 = vld [vmem:[#allocation8 + $0xa8] sm:$0xff]  ;;  %vm478_vm10 = vcmp.gt.f32.partialorder %v2226_v31, 20.0 }
  0xa2   :  { %v756_v56 = vadd.f32 %v740_v40, %v723_v59  ;;  %v603_v10 = vmul.f32 0.6931472, %v1515_v5  ;;  %1351 = vmatprep.subr.mxu1 %v1722_v0  ;;  %v508_v34 = vmul.f32 1.442695, %v491_v18  ;;  %v506_v38 = vmul.f32 1.442695, %v490_v19 }
  0xa3   :  { %vm477_vm12 = vcmp.gt.f32.partialorder %v2239_v11, 20.0  ;;  %vm476_vm15 = vcmp.gt.f32.partialorder %v2265_v55, 20.0  ;;  %vm475_vm1 = vcmp.gt.f32.partialorder %v2268_v47, 20.0  ;;  %vm474_vm2 = vcmp.gt.f32.partialorder %v2271_v48, 20.0  ;;  %v2323_v5 = vld [vmem:[#allocation7 + $0x170] sm:$0xff] }
  0xa4   :  { %1352 = vmatpush3.msra.mxu1 %v756_v56  ;;  %v609_v20 = vsel %vm608_vm0, %v606_v28, %v603_v10  ;;  %v703_v28 = vld [vmem:[#allocation8 + $0xa0] sm:$0xff] }
  0xa5   :  { %1353 = vmatprep.subr.mxu1 %v1722_v0  ;;  %v689_v62 = vsel %vm481_vm4, %v2050_v60, %v609_v20 }
  0xa6   :  { %v722_v2 = vmul.f32 %v706_v24, %v689_v62  ;;  %v737_v24 = vld [vmem:[#allocation5 + $0xa8] sm:$0xff] }
  0xa7   :  { %v1517_v35 = vpop.eup %1516 }
  0xa8   :  { %v755_v15 = vadd.f32 %v739_v30, %v722_v2  ;;  %v592_v23 = vadd.f32 1.0, %v1517_v35  ;;  %v595_v53 = vmul.f32 -0.5, %v1517_v35  ;;  %v598_v51 = vand.u32 2147483647, %v1517_v35 }
  0xaa   :  { %1354 = vmatpush3.msra.mxu1 %v755_v15  ;;  %1524 = vlog2.f32 %v592_v23  ;;  %v596_v22 = vadd.f32 1.0, %v595_v53  ;;  %vm599_vm5 = vcmp.lt.f32.partialorder %v598_v51, 0.0004427343  ;;  %v736_v15 = vld [vmem:[#allocation5 + $0xa0] sm:$0xff]  ;;  %v702_v23 = vld [vmem:[#allocation8 + $0x98] sm:$0xff] }
  0xab   :  { %v1519_v63 = vpop.eup %1518  ;;  %1355 = vmatprep.subr.mxu1 %v1722_v0  ;;  %v735_v53 = vld [vmem:[#allocation5 + $0x98] sm:$0xff] }
  0xac   :  { %v1521_v32 = vpop.eup %1520  ;;  %v583_v33 = vadd.f32 1.0, %v1519_v63  ;;  %v586_v45 = vmul.f32 -0.5, %v1519_v63  ;;  %v597_v6 = vmul.f32 %v1517_v35, %v596_v22  ;;  %v589_v7 = vand.u32 2147483647, %v1519_v63 }
  0xad   :  { %v574_v37 = vadd.f32 1.0, %v1521_v32  ;;  %v577_v49 = vmul.f32 -0.5, %v1521_v32  ;;  %v580_v36 = vand.u32 2147483647, %v1521_v32 }
  0xae   :  { %v1523_v60 = vpop.eup %1522  ;;  %1526 = vlog2.f32 %v583_v33  ;;  %v587_v43 = vadd.f32 1.0, %v586_v45  ;;  %vm2276_vm7 = vcmp.lt.f32.partialorder %v589_v7, 0.0004427343 }
  0xaf   :  { %1528 = vlog2.f32 %v574_v37  ;;  %v565_v27 = vadd.f32 1.0, %v1523_v60  ;;  %v568_v9 = vmul.f32 -0.5, %v1523_v60  ;;  %v578_v41 = vadd.f32 1.0, %v577_v49 }
  0xb0   :  { %v588_v13 = vmul.f32 %v1519_v63, %v587_v43  ;;  %v571_v58 = vand.u32 2147483647, %v1523_v60  ;;  %vm2281_vm9 = vcmp.lt.f32.partialorder %v580_v36, 0.0004427343 }
  0xb1   :  { %1530 = vlog2.f32 %v565_v27  ;;  %v569_v39 = vadd.f32 1.0, %v568_v9  ;;  %v579_v46 = vmul.f32 %v1521_v32, %v578_v41  ;;  %v2356_v9 = vld [vmem:[#allocation7 + $0x118] sm:$0xff] }
  0xb2   :  { %1532 = vpow2.f32 %v510_v57  ;;  %vm2288_vm11 = vcmp.lt.f32.partialorder %v571_v58, 0.0004427343 }
  0xb3   :  { %1534 = vpow2.f32 %v508_v34 }
  0xb4   :  { %1536 = vpow2.f32 %v506_v38 }
  0xb7   :  { %v1525_v4 = vpop.eup %1524 }
  0xb8   :  { %v594_v44 = vmul.f32 0.6931472, %v1525_v4 }
  0xba   :  { %v600_v1 = vsel %vm599_vm5, %v597_v6, %v594_v44  ;;  %v701_v44 = vld [vmem:[#allocation8 + $0x90] sm:$0xff] }
  0xbb   :  { %v1527_v16 = vpop.eup %1526  ;;  %v688_v42 = vsel %vm480_vm6, %v2075_v54, %v600_v1  ;;  %v570_v54 = vmul.f32 %v1523_v60, %v569_v39  ;;  %vm874_vm6 = vcmp.gt.f32.partialorder %v2323_v5, 20.0 }
  0xbc   :  { %v1529_v25 = vpop.eup %1528  ;;  %v721_v26 = vmul.f32 %v705_v50, %v688_v42  ;;  %v585_v17 = vmul.f32 0.6931472, %v1527_v16  ;;  %v734_v16 = vld [vmem:[#allocation5 + $0x90] sm:$0xff] }
  0xbd   :  { %v576_v52 = vmul.f32 0.6931472, %v1529_v25 }
  0xbe   :  { %v1531_v40 = vpop.eup %1530  ;;  %v754_v21 = vadd.f32 %v738_v61, %v721_v26  ;;  %v591_v59 = vsel %vm2276_vm7, %v588_v13, %v585_v17  ;;  %v700_v61 = vld [vmem:[#allocation8 + $0x88] sm:$0xff] }
  0xbf   :  { %v1533_v56 = vpop.eup %1532  ;;  %v687_v10 = vsel %vm479_vm8, %v2211_v29, %v591_v59  ;;  %v582_v20 = vsel %vm2281_vm9, %v579_v46, %v576_v52  ;;  %v567_v62 = vmul.f32 0.6931472, %v1531_v40  ;;  %v733_v17 = vld [vmem:[#allocation5 + $0x88] sm:$0xff] }
  0xc0   :  { %v1535_v30 = vpop.eup %1534  ;;  %1356 = vmatpush3.msra.mxu1 %v754_v21  ;;  %v720_v2 = vmul.f32 %v704_v3, %v687_v10  ;;  %v686_v35 = vsel %vm478_vm10, %v2226_v31, %v582_v20  ;;  %v556_v63 = vadd.f32 1.0, %v1533_v56  ;;  %v559_v34 = vmul.f32 -0.5, %v1533_v56  ;;  %v699_v3 = vld [vmem:[#allocation8 + $0x80] sm:$0xff] }
  0xc1   :  { %1357 = vmatprep.subr.mxu1 %v1722_v0  ;;  %v719_v29 = vmul.f32 %v703_v28, %v686_v35  ;;  %v573_v32 = vsel %vm2288_vm11, %v570_v54, %v567_v62  ;;  %v547_v33 = vadd.f32 1.0, %v1535_v30  ;;  %v1537_v37 = vpop.eup %1536  ;;  %v562_v22 = vand.u32 2147483647, %v1533_v56  ;;  %v2329_v20 = vld [vmem:[#allocation7 + $0x160] sm:$0xff] }
  0xc2   :  { %v753_v8 = vadd.f32 %v737_v24, %v720_v2  ;;  %v685_v60 = vsel %vm477_vm12, %v2239_v11, %v573_v32  ;;  %1538 = vlog2.f32 %v556_v63  ;;  %v538_v31 = vadd.f32 1.0, %v1537_v37  ;;  %v2332_v2 = vld [vmem:[#allocation7 + $0x158] sm:$0xff]  ;;  %v2335_v63 = vld [vmem:[#allocation7 + $0x150] sm:$0xff] }
  0xc3   :  { %v752_v18 = vadd.f32 %v736_v15, %v719_v29  ;;  %v718_v27 = vmul.f32 %v702_v23, %v685_v60  ;;  %1540 = vlog2.f32 %v547_v33  ;;  %v560_v19 = vadd.f32 1.0, %v559_v34  ;;  %v2338_v33 = vld [vmem:[#allocation7 + $0x148] sm:$0xff]  ;;  %v2347_v34 = vld [vmem:[#allocation7 + $0x130] sm:$0xff] }
  0xc4   :  { %1358 = vmatpush3.msra.mxu1 %v753_v8  ;;  %1542 = vlog2.f32 %v538_v31  ;;  %v550_v11 = vmul.f32 -0.5, %v1535_v30  ;;  %v541_v49 = vmul.f32 -0.5, %v1537_v37  ;;  %vm2306_vm13 = vcmp.lt.f32.partialorder %v562_v22, 0.0004427343  ;;  %v2341_v8 = vld [vmem:[#allocation7 + $0x140] sm:$0xff]  ;;  %v2350_v22 = vld [vmem:[#allocation7 + $0x128] sm:$0xff] }
  0xc5   :  { %1359 = vmatprep.subr.mxu1 %v1722_v0  ;;  %v751_v57 = vadd.f32 %v735_v53, %v718_v27  ;;  %v561_v45 = vmul.f32 %v1533_v56, %v560_v19  ;;  %v553_v6 = vand.u32 2147483647, %v1535_v30  ;;  %v544_v13 = vand.u32 2147483647, %v1537_v37 }
  0xc6   :  { %1360 = vmatpush3.msra.mxu1 %v752_v18  ;;  %v551_v51 = vadd.f32 1.0, %v550_v11  ;;  %v542_v41 = vadd.f32 1.0, %v541_v49  ;;  %v890_v56 = vmin.f32 %v2323_v5, 20.0  ;;  %v887_v15 = vmin.f32 %v2332_v2, 20.0  ;;  %v2344_v18 = vld [vmem:[#allocation7 + $0x138] sm:$0xff] }
  0xc7   :  { %1361 = vmatprep.subr.mxu1 %v1722_v0  ;;  %vm554_vm14 = vcmp.lt.f32.partialorder %v553_v6, 0.0004427343  ;;  %vm545_vm3 = vcmp.lt.f32.partialorder %v544_v13, 0.0004427343  ;;  %v886_v32 = vmin.f32 %v2335_v63, 20.0  ;;  %v884_v53 = vmin.f32 %v2341_v8, 20.0 }
  0xc8   :  { %1362 = vmatpush3.msra.mxu1 %v751_v57  ;;  %v552_v7 = vmul.f32 %v1535_v30, %v551_v51  ;;  %v543_v1 = vmul.f32 %v1537_v37, %v542_v41  ;;  %v920_v62 = vmul.f32 1.442695, %v890_v56  ;;  %v888_v30 = vmin.f32 %v2329_v20, 20.0  ;;  %v2353_v51 = vld [vmem:[#allocation7 + $0x120] sm:$0xff] }
  0xc9   :  { %1363 = vmatprep.subr.mxu1 %v1722_v0  ;;  %v914_v29 = vmul.f32 1.442695, %v887_v15  ;;  %v885_v37 = vmin.f32 %v2338_v33, 20.0  ;;  %v912_v60 = vmul.f32 1.442695, %v886_v32  ;;  %v883_v31 = vmin.f32 %v2344_v18, 20.0 }
  0xca   :  { %v916_v23 = vmul.f32 1.442695, %v888_v30  ;;  %v908_v57 = vmul.f32 1.442695, %v884_v53  ;;  %v882_v11 = vmin.f32 %v2347_v34, 20.0  ;;  %vm872_vm9 = vcmp.gt.f32.partialorder %v2329_v20, 20.0 }
  0xcb   :  { %v910_v27 = vmul.f32 1.442695, %v885_v37  ;;  %v906_v19 = vmul.f32 1.442695, %v883_v31  ;;  %vm871_vm11 = vcmp.gt.f32.partialorder %v2332_v2, 20.0 }
  0xcc   :  { %v904_v49 = vmul.f32 1.442695, %v882_v11 }
  0xcf   :  { %v1539_v38 = vpop.eup %1538 }
  0xd0   :  { %v1541_v43 = vpop.eup %1540  ;;  %v558_v4 = vmul.f32 0.6931472, %v1539_v38  ;;  %v880_v38 = vmin.f32 %v2353_v51, 20.0 }
  0xd1   :  { %v549_v36 = vmul.f32 0.6931472, %v1541_v43  ;;  %v1543_v50 = vpop.eup %1542 }
  0xd2   :  { %v564_v39 = vsel %vm2306_vm13, %v561_v45, %v558_v4  ;;  %v540_v12 = vmul.f32 0.6931472, %v1543_v50  ;;  %v881_v45 = vmin.f32 %v2350_v22, 20.0  ;;  %v879_v4 = vmin.f32 %v2356_v9, 20.0 }
  0xd3   :  { %v684_v58 = vsel %vm476_vm15, %v2265_v55, %v564_v39  ;;  %v555_v42 = vsel %vm554_vm14, %v552_v7, %v549_v36  ;;  %v732_v55 = vld [vmem:[#allocation5 + $0x80] sm:$0xff]  ;;  %vm870_vm13 = vcmp.gt.f32.partialorder %v2335_v63, 20.0  ;;  %vm869_vm14 = vcmp.gt.f32.partialorder %v2338_v33, 20.0 }
  0xd4   :  { %v717_v46 = vmul.f32 %v701_v44, %v684_v58  ;;  %v683_v25 = vsel %vm475_vm1, %v2268_v47, %v555_v42  ;;  %v546_v14 = vsel %vm545_vm3, %v543_v1, %v540_v12  ;;  %v2320_v47 = vld [vmem:[#allocation7 + $0x178] sm:$0xff]  ;;  %v902_v6 = vmul.f32 1.442695, %v881_v45 }
  0xd5   :  { %v716_v26 = vmul.f32 %v700_v61, %v683_v25  ;;  %v682_v54 = vsel %vm474_vm2, %v2271_v48, %v546_v14  ;;  %v891_v28 = vmin.f32 %v2320_v47, 20.0  ;;  %v2326_v48 = vld [vmem:[#allocation7 + $0x168] sm:$0xff]  ;;  %v900_v44 = vmul.f32 1.442695, %v880_v38 }
  0xd6   :  { %v750_v52 = vadd.f32 %v734_v16, %v717_v46  ;;  %v715_v21 = vmul.f32 %v699_v3, %v682_v54  ;;  %v889_v24 = vmin.f32 %v2326_v48, 20.0  ;;  %v898_v12 = vmul.f32 1.442695, %v879_v4 }
  0xd7   :  { %v749_v40 = vadd.f32 %v733_v17, %v716_v26  ;;  %v922_v10 = vmul.f32 1.442695, %v891_v28  ;;  %vm875_vm4 = vcmp.gt.f32.partialorder %v2320_v47, 20.0  ;;  %vm873_vm8 = vcmp.gt.f32.partialorder %v2326_v48, 20.0 }
  0xd8   :  { %1364 = vmatpush3.msra.mxu1 %v750_v52  ;;  %v748_v59 = vadd.f32 %v732_v55, %v715_v21  ;;  %v918_v35 = vmul.f32 1.442695, %v889_v24  ;;  %vm868_vm3 = vcmp.gt.f32.partialorder %v2341_v8, 20.0 }
  0xd9   :  { %1365 = vmatprep.subr.mxu1 %v1722_v0  ;;  %1544 = vpow2.f32 %v922_v10 }
  0xda   :  { %1366 = vmatpush3.msra.mxu1 %v749_v40  ;;  %1546 = vpow2.f32 %v920_v62 }
  0xdb   :  { %1367 = vmatprep.subr.mxu1 %v1722_v0  ;;  %1548 = vpow2.f32 %v918_v35 }
  0xdc   :  { %1368 = vmatpush3.msra.mxu1 %v748_v59  ;;  %1550 = vpow2.f32 %v916_v23 }
  0xdd   :  { %1552 = vpow2.f32 %v914_v29 }
  0xde   :  { %1554 = vpow2.f32 %v912_v60 }
  0xdf   :  { %1556 = vpow2.f32 %v910_v27 }
  0xe0   :  { %1558 = vpow2.f32 %v908_v57 }
  0xe1   :  { %1560 = vpow2.f32 %v906_v19 }
  0xe2   :  { %1562 = vpow2.f32 %v904_v49 }
  0xe3   :  { %1564 = vpow2.f32 %v902_v6 }
  0xe6   :  { %v1545_v43 = vpop.eup %1544 }
  0xe7   :  { %v1547_v7 = vpop.eup %1546  ;;  %v1059_v41 = vadd.f32 1.0, %v1545_v43  ;;  %v1062_v50 = vmul.f32 -0.5, %v1545_v43  ;;  %v1065_v42 = vand.u32 2147483647, %v1545_v43 }
  0xe8   :  { %v1549_v36 = vpop.eup %1548  ;;  %v1050_v39 = vadd.f32 1.0, %v1547_v7  ;;  %v1053_v1 = vmul.f32 -0.5, %v1547_v7  ;;  %v1056_v46 = vand.u32 2147483647, %v1547_v7 }
  0xe9   :  { %v1551_v13 = vpop.eup %1550  ;;  %1566 = vlog2.f32 %v1059_v41  ;;  %v1041_v58 = vadd.f32 1.0, %v1549_v36  ;;  %v1044_v61 = vmul.f32 -0.5, %v1549_v36  ;;  %v1063_v17 = vadd.f32 1.0, %v1062_v50 }
  0xea   :  { %v1553_v16 = vpop.eup %1552  ;;  %1568 = vlog2.f32 %v1050_v39  ;;  %v1032_v25 = vadd.f32 1.0, %v1551_v13  ;;  %v1054_v14 = vadd.f32 1.0, %v1053_v1  ;;  %v1047_v3 = vand.u32 2147483647, %v1549_v36 }
  0xeb   :  { %1570 = vlog2.f32 %v1041_v58  ;;  %v1555_v26 = vpop.eup %1554  ;;  %v1035_v54 = vmul.f32 -0.5, %v1551_v13  ;;  %v1023_v40 = vadd.f32 1.0, %v1553_v16  ;;  %vm2359_vm0 = vcmp.lt.f32.partialorder %v1065_v42, 0.0004427343 }
  0xec   :  { %1572 = vpow2.f32 %v900_v44  ;;  %v1557_v52 = vpop.eup %1556  ;;  %v1045_v55 = vadd.f32 1.0, %v1044_v61  ;;  %v1026_v59 = vmul.f32 -0.5, %v1553_v16  ;;  %vm2366_vm5 = vcmp.lt.f32.partialorder %v1056_v46, 0.0004427343 }
  0xed   :  { %1574 = vlog2.f32 %v1032_v25  ;;  %v2363_v28 = vpop.eup %1558  ;;  %v1038_v10 = vand.u32 2147483647, %v1551_v13  ;;  %v1014_v24 = vadd.f32 1.0, %v1555_v26  ;;  %v1017_v62 = vmul.f32 -0.5, %v1555_v26 }
  0xee   :  { %1576 = vpow2.f32 %v898_v12  ;;  %v1064_v30 = vmul.f32 %v1545_v43, %v1063_v17  ;;  %v2371_v35 = vmul.f32 %v1547_v7, %v1054_v14  ;;  %vm2373_vm7 = vcmp.lt.f32.partialorder %v1047_v3, 0.0004427343  ;;  %v2377_v29 = vpop.eup %1560  ;;  %v1100_v17 = vld [vmem:[#allocation8 + $0x178] sm:$0xff] }
  0xef   :  { %1578 = vlog2.f32 %v1023_v40  ;;  %v1005_v23 = vadd.f32 1.0, %v1557_v52  ;;  %v1036_v32 = vadd.f32 1.0, %v1035_v54  ;;  %v1029_v37 = vand.u32 2147483647, %v1553_v16  ;;  %v2383_v57 = vpop.eup %1562  ;;  %v1099_v40 = vld [vmem:[#allocation8 + $0x170] sm:$0xff] }
  0xf0   :  { %1580 = vlog2.f32 %v1014_v24  ;;  %v1008_v60 = vmul.f32 -0.5, %v1557_v52  ;;  %v2380_v53 = vmul.f32 %v1549_v36, %v1045_v55  ;;  %v1027_v27 = vadd.f32 1.0, %v1026_v59  ;;  %v2392_v4 = vpop.eup %1564 }
  0xf1   :  { %1582 = vlog2.f32 %v1005_v23  ;;  %v996_v31 = vadd.f32 1.0, %v2363_v28  ;;  %vm2386_vm10 = vcmp.lt.f32.partialorder %v1038_v10, 0.0004427343  ;;  %v1018_v11 = vadd.f32 1.0, %v1017_v62  ;;  %v1133_v23 = vld [vmem:[#allocation5 + $0x178] sm:$0xff] }
  0xf2   :  { %v1020_v45 = vand.u32 2147483647, %v1555_v26  ;;  %v999_v49 = vmul.f32 -0.5, %v2363_v28  ;;  %v1009_v38 = vadd.f32 1.0, %v1008_v60  ;;  %v1011_v6 = vand.u32 2147483647, %v1557_v52 }
  0xf3   :  { %1584 = vlog2.f32 %v996_v31  ;;  %v987_v43 = vadd.f32 1.0, %v2377_v29  ;;  %v1037_v7 = vmul.f32 %v1551_v13, %v1036_v32  ;;  %vm2395_vm12 = vcmp.lt.f32.partialorder %v1029_v37, 0.0004427343  ;;  %v1132_v31 = vld [vmem:[#allocation5 + $0x170] sm:$0xff] }
  0xf4   :  { %v1002_v44 = vand.u32 2147483647, %v2363_v28  ;;  %v990_v36 = vmul.f32 -0.5, %v2377_v29  ;;  %v2401_v39 = vmul.f32 %v1553_v16, %v1027_v27  ;;  %v1000_v1 = vadd.f32 1.0, %v999_v49 }
  0xf5   :  { %1586 = vlog2.f32 %v987_v43  ;;  %v978_v58 = vadd.f32 1.0, %v2383_v57  ;;  %v2405_v13 = vmul.f32 %v1555_v26, %v1018_v11  ;;  %vm2407_vm15 = vcmp.lt.f32.partialorder %v1020_v45, 0.0004427343 }
  0xf6   :  { %v1567_v50 = vpop.eup %1566  ;;  %v993_v46 = vand.u32 2147483647, %v2377_v29  ;;  %v2413_v14 = vmul.f32 %v1557_v52, %v1009_v38  ;;  %vm2415_vm1 = vcmp.lt.f32.partialorder %v1011_v6, 0.0004427343  ;;  %vm2423_vm2 = vcmp.lt.f32.partialorder %v1002_v44, 0.0004427343 }
  0xf7   :  { %v1569_v42 = vpop.eup %1568  ;;  %v1061_v61 = vmul.f32 0.6931472, %v1567_v50  ;;  %1588 = vlog2.f32 %v978_v58  ;;  %v991_v10 = vadd.f32 1.0, %v990_v36  ;;  %v969_v52 = vadd.f32 1.0, %v2392_v4  ;;  %v1131_v38 = vld [vmem:[#allocation5 + $0x168] sm:$0xff]  ;;  %v1097_v6 = vld [vmem:[#allocation8 + $0x160] sm:$0xff] }
  0xf8   :  { %v1571_v25 = vpop.eup %1570  ;;  %v1052_v16 = vmul.f32 0.6931472, %v1569_v42  ;;  %v2436_v32 = vmul.f32 %v2363_v28, %v1000_v1  ;;  %v981_v37 = vmul.f32 -0.5, %v2383_v57  ;;  %v1096_v58 = vld [vmem:[#allocation8 + $0x158] sm:$0xff] }
  0xf9   :  { %v2419_v26 = vpop.eup %1572  ;;  %v1067_v54 = vsel %vm2359_vm0, %v1064_v30, %v1061_v61  ;;  %v1043_v55 = vmul.f32 0.6931472, %v1571_v25  ;;  %v1098_v30 = vld [vmem:[#allocation8 + $0x168] sm:$0xff]  ;;  %vm2447_vm0 = vcmp.lt.f32.partialorder %v993_v46, 0.0004427343  ;;  %1590 = vlog2.f32 %v969_v52 }
  0xfa   :  { %v1575_v24 = vpop.eup %1574  ;;  %v1083_v62 = vsel %vm875_vm4, %v2320_v47, %v1067_v54  ;;  %v1058_v21 = vsel %vm2366_vm5, %v2371_v35, %v1052_v16  ;;  %vm867_vm4 = vcmp.gt.f32.partialorder %v2344_v18, 20.0  ;;  %v992_v42 = vmul.f32 %v2377_v29, %v991_v10  ;;  %v1129_v16 = vld [vmem:[#allocation5 + $0x158] sm:$0xff]  ;;  %v1095_v29 = vld [vmem:[#allocation8 + $0x150] sm:$0xff] }
  0xfb   :  { %v2439_v60 = vpop.eup %1576  ;;  %v1116_v27 = vmul.f32 %v1100_v17, %v1083_v62  ;;  %v1082_v47 = vsel %vm874_vm6, %v2323_v5, %v1058_v21  ;;  %v1049_v56 = vsel %vm2373_vm7, %v2380_v53, %v1043_v55  ;;  %v1034_v35 = vmul.f32 0.6931472, %v1575_v24  ;;  %v1122_v62 = vld [vmem:[#allocation5 + $0x120] sm:$0xff] }
  0xfc   :  { %v1579_v28 = vpop.eup %1578  ;;  %v1115_v45 = vmul.f32 %v1099_v40, %v1082_v47  ;;  %v1081_v49 = vsel %vm873_vm8, %v2326_v48, %v1049_v56  ;;  %v984_v5 = vand.u32 2147483647, %v2383_v57  ;;  %v1130_v48 = vld [vmem:[#allocation5 + $0x160] sm:$0xff]  ;;  %vm866_vm5 = vcmp.gt.f32.partialorder %v2347_v34, 20.0  ;;  %v1127_v56 = vld [vmem:[#allocation5 + $0x148] sm:$0xff] }
  0xfd   :  { %v1149_v15 = vadd.f32 %v1133_v23, %v1116_v27  ;;  %v1114_v53 = vmul.f32 %v1098_v30, %v1081_v49  ;;  %v1040_v43 = vsel %vm2386_vm10, %v1037_v7, %v1034_v35  ;;  %v1025_v44 = vmul.f32 0.6931472, %v1579_v28  ;;  %v1581_v36 = vpop.eup %1580  ;;  %v1128_v23 = vld [vmem:[#allocation5 + $0x150] sm:$0xff]  ;;  %v1093_v47 = vld [vmem:[#allocation8 + $0x140] sm:$0xff]  ;;  %v1092_v49 = vld [vmem:[#allocation8 + $0x138] sm:$0xff] }
  0xfe   :  { %v1148_v50 = vadd.f32 %v1132_v31, %v1115_v45  ;;  %v1080_v1 = vsel %vm872_vm9, %v2329_v20, %v1040_v43  ;;  %v982_v61 = vadd.f32 1.0, %v981_v37  ;;  %v1583_v46 = vpop.eup %1582  ;;  %v1016_v7 = vmul.f32 0.6931472, %v1581_v36  ;;  %v1091_v43 = vld [vmem:[#allocation8 + $0x130] sm:$0xff]  ;;  %v1125_v36 = vld [vmem:[#allocation5 + $0x138] sm:$0xff] }
  0xff   :  { %1373 = vmatpush3.msra.mxu0 %v1149_v15  ;;  %v1147_v25 = vadd.f32 %v1131_v38, %v1114_v53  ;;  %v1113_v17 = vmul.f32 %v1097_v6, %v1080_v1  ;;  %v1031_v19 = vsel %vm2395_vm12, %v2401_v39, %v1025_v44  ;;  %v1007_v54 = vmul.f32 0.6931472, %v1583_v46  ;;  %v1094_v39 = vld [vmem:[#allocation8 + $0x148] sm:$0xff] }
 0x100   :  { %1374 = vmatprep.subr.mxu0 %v1722_v0  ;;  %v1079_v20 = vsel %vm871_vm11, %v2332_v2, %v1031_v19  ;;  %v972_v40 = vmul.f32 -0.5, %v2392_v4  ;;  %v960_v55 = vadd.f32 1.0, %v2419_v26  ;;  %v1585_v10 = vpop.eup %1584  ;;  %v1022_v41 = vsel %vm2407_vm15, %v2405_v13, %v1016_v7 }
 0x101   :  { %1375 = vmatpush3.msra.mxu0 %v1148_v50  ;;  %v1146_v52 = vadd.f32 %v1130_v48, %v1113_v17  ;;  %v1112_v24 = vmul.f32 %v1096_v58, %v1079_v20  ;;  %vm2475_vm6 = vcmp.lt.f32.partialorder %v984_v5, 0.0004427343  ;;  %v1078_v2 = vsel %vm870_vm13, %v2335_v63, %v1022_v41  ;;  %v1126_v5 = vld [vmem:[#allocation5 + $0x140] sm:$0xff]  ;;  %v1090_v17 = vld [vmem:[#allocation8 + $0x128] sm:$0xff] }
 0x102   :  { %1376 = vmatprep.subr.mxu0 %v1722_v0  ;;  %v1013_v21 = vsel %vm2415_vm1, %v2413_v14, %v1007_v54  ;;  %v998_v30 = vmul.f32 0.6931472, %v1585_v10  ;;  %1592 = vlog2.f32 %v960_v55  ;;  %v1587_v12 = vpop.eup %1586  ;;  %v1111_v37 = vmul.f32 %v1095_v29, %v1078_v2  ;;  %v1123_v29 = vld [vmem:[#allocation5 + $0x128] sm:$0xff] }
 0x103   :  { %1377 = vmatpush3.msra.mxu0 %v1147_v25  ;;  %v1145_v13 = vadd.f32 %v1129_v16, %v1112_v24  ;;  %v1077_v27 = vsel %vm869_vm14, %v2338_v33, %v1013_v21  ;;  %v983_v31 = vmul.f32 %v2383_v57, %v982_v61  ;;  %v989_v3 = vmul.f32 0.6931472, %v1587_v12  ;;  %v1124_v61 = vld [vmem:[#allocation5 + $0x130] sm:$0xff] }
 0x104   :  { %1378 = vmatprep.subr.mxu0 %v1722_v0  ;;  %v1110_v63 = vmul.f32 %v1094_v39, %v1077_v27  ;;  %v1004_v14 = vsel %vm2423_vm2, %v2436_v32, %v998_v30  ;;  %v973_v35 = vadd.f32 1.0, %v972_v40  ;;  %v1589_v28 = vpop.eup %1588  ;;  %v1144_v45 = vadd.f32 %v1128_v23, %v1111_v37 }
 0x105   :  { %1379 = vmatpush3.msra.mxu0 %v1146_v52  ;;  %v1076_v33 = vsel %vm868_vm3, %v2341_v8, %v1004_v14  ;;  %v975_v57 = vand.u32 2147483647, %v2392_v4  ;;  %v951_v38 = vadd.f32 1.0, %v2439_v60  ;;  %v995_v59 = vsel %vm2447_vm0, %v992_v42, %v989_v3 }
 0x106   :  { %1380 = vmatprep.subr.mxu0 %v1722_v0  ;;  %v1109_v6 = vmul.f32 %v1093_v47, %v1076_v33  ;;  %v980_v32 = vmul.f32 0.6931472, %v1589_v28  ;;  %v963_v15 = vmul.f32 -0.5, %v2419_v26  ;;  %v1143_v53 = vadd.f32 %v1127_v56, %v1110_v63  ;;  %v1591_v1 = vpop.eup %1590  ;;  %v1121_v47 = vld [vmem:[#allocation5 + $0x118] sm:$0xff] }
 0x107   :  { %1381 = vmatpush3.msra.mxu0 %v1145_v13  ;;  %v1075_v8 = vsel %vm867_vm4, %v2344_v18, %v995_v59  ;;  %1594 = vlog2.f32 %v951_v38  ;;  %v974_v11 = vmul.f32 %v2392_v4, %v973_v35  ;;  %vm2513_vm7 = vcmp.lt.f32.partialorder %v975_v57, 0.0004427343  ;;  %v1088_v13 = vld [vmem:[#allocation8 + $0x118] sm:$0xff]  ;;  %v846_v35 = vld [vmem:[#allocation7 + $0x110] sm:$0xff] }
 0x108   :  { %1382 = vmatprep.subr.mxu0 %v1722_v0  ;;  %v1108_v44 = vmul.f32 %v1092_v49, %v1075_v8  ;;  %v986_v50 = vsel %vm2475_vm6, %v983_v31, %v980_v32  ;;  %v1142_v48 = vadd.f32 %v1126_v5, %v1109_v6  ;;  %vm865_vm8 = vcmp.gt.f32.partialorder %v2350_v22, 20.0  ;;  %v844_v49 = vld [vmem:[#allocation7 + $0x100] sm:$0xff] }
 0x109   :  { %1383 = vmatpush3.msra.mxu0 %v1144_v45  ;;  %v1074_v58 = vsel %vm866_vm5, %v2347_v34, %v986_v50  ;;  %v971_v46 = vmul.f32 0.6931472, %v1591_v1  ;;  %v964_v25 = vadd.f32 1.0, %v963_v15  ;;  %v966_v19 = vand.u32 2147483647, %v2419_v26 }
 0x10a   :  { %1384 = vmatprep.subr.mxu0 %v1722_v0  ;;  %v1107_v42 = vmul.f32 %v1091_v43, %v1074_v58  ;;  %v1141_v4 = vadd.f32 %v1125_v36, %v1108_v44  ;;  %v954_v7 = vmul.f32 -0.5, %v2439_v60  ;;  %vm864_vm10 = vcmp.gt.f32.partialorder %v2353_v51, 20.0 }
 0x10b   :  { %1385 = vmatpush3.msra.mxu0 %v1143_v53  ;;  %v977_v34 = vsel %vm2513_vm7, %v974_v11, %v971_v46  ;;  %v965_v40 = vmul.f32 %v2419_v26, %v964_v25  ;;  %vm967_vm9 = vcmp.lt.f32.partialorder %v966_v19, 0.0004427343  ;;  %v957_v41 = vand.u32 2147483647, %v2439_v60 }
 0x10c   :  { %1386 = vmatprep.subr.mxu0 %v1722_v0  ;;  %v1140_v20 = vadd.f32 %v1124_v61, %v1107_v42  ;;  %v1073_v16 = vsel %vm865_vm8, %v2350_v22, %v977_v34  ;;  %v955_v10 = vadd.f32 1.0, %v954_v7  ;;  %v1089_v22 = vld [vmem:[#allocation8 + $0x120] sm:$0xff]  ;;  %vm863_vm12 = vcmp.gt.f32.partialorder %v2356_v9, 20.0  ;;  %v1087_v7 = vld [vmem:[#allocation8 + $0x110] sm:$0xff] }
 0x10d   :  { %1387 = vmatpush3.msra.mxu0 %v1142_v48  ;;  %v1106_v54 = vmul.f32 %v1090_v17, %v1073_v16  ;;  %vm958_vm11 = vcmp.lt.f32.partialorder %v957_v41, 0.0004427343  ;;  %v878_v28 = vmin.f32 %v846_v35, 20.0  ;;  %v876_v38 = vmin.f32 %v844_v49, 20.0 }
 0x10e   :  { %1388 = vmatprep.subr.mxu0 %v1722_v0  ;;  %v956_v2 = vmul.f32 %v2439_v60, %v955_v10  ;;  %v1246_v60 = vld [vmem:[%s2556_s4] ss:$0 sm:$0xff]  ;;  %vm862_vm15 = vcmp.gt.f32.partialorder %v846_v35, 20.0  ;;  %v1086_v10 = vld [vmem:[#allocation8 + $0x108] sm:$0xff]  ;;  %vm860_vm3 = vcmp.gt.f32.partialorder %v844_v49, 20.0 }
 0x10f   :  { %v1593_v55 = vpop.eup %1592  ;;  %1389 = vmatpush3.msra.mxu0 %v1141_v4  ;;  %v1139_v52 = vadd.f32 %v1123_v29, %v1106_v54  ;;  %v896_v45 = vmul.f32 1.442695, %v878_v28  ;;  %v892_v6 = vmul.f32 1.442695, %v876_v38 }
 0x110   :  { %1390 = vmatprep.subr.mxu0 %v1722_v0  ;;  %v962_v24 = vmul.f32 0.6931472, %v1593_v55 }
 0x111   :  { %1391 = vmatpush3.msra.mxu0 %v1140_v20  ;;  %1596 = vpow2.f32 %v896_v45 }
 0x112   :  { %1392 = vmatprep.subr.mxu0 %v1722_v0  ;;  %v968_v39 = vsel %vm967_vm9, %v965_v40, %v962_v24  ;;  %v1120_v40 = vld [vmem:[#allocation5 + $0x110] sm:$0xff] }
 0x113   :  { %1393 = vmatpush3.msra.mxu0 %v1139_v52  ;;  %v1072_v26 = vsel %vm864_vm10, %v2353_v51, %v968_v39 }
 0x114   :  { %v1595_v23 = vpop.eup %1594  ;;  %1394 = vmatprep.subr.mxu0 %v1722_v0  ;;  %v1105_v21 = vmul.f32 %v1089_v22, %v1072_v26  ;;  %v1119_v22 = vld [vmem:[#allocation5 + $0x108] sm:$0xff]  ;;  %v1085_v26 = vld [vmem:[#allocation8 + $0x100] sm:$0xff] }
 0x115   :  { %v953_v30 = vmul.f32 0.6931472, %v1595_v23 }
 0x116   :  { %v1138_v12 = vadd.f32 %v1122_v62, %v1105_v21  ;;  %v1118_v21 = vld [vmem:[#allocation5 + $0x100] sm:$0xff] }
 0x117   :  { %v959_v37 = vsel %vm958_vm11, %v956_v2, %v953_v30 }
 0x118   :  { %1395 = vmatpush3.msra.mxu0 %v1138_v12  ;;  %v1071_v27 = vsel %vm863_vm12, %v2356_v9, %v959_v37  ;;  %v845_v9 = vld [vmem:[#allocation7 + $0x108] sm:$0xff]  ;;  %v1248_v12 = vld [vmem:[%s2556_s4 + $0x1] ss:$0 sm:$0xff] }
 0x119   :  { %1396 = vmatprep.subr.mxu0 %v1722_v0  ;;  %v1104_v51 = vmul.f32 %v1088_v13, %v1071_v27  ;;  %v877_v33 = vmin.f32 %v845_v9, 20.0  ;;  %vm861_vm1 = vcmp.gt.f32.partialorder %v845_v9, 20.0 }
 0x11b   :  { %v1137_v31 = vadd.f32 %v1121_v47, %v1104_v51  ;;  %v894_v57 = vmul.f32 1.442695, %v877_v33  ;;  %v1250_v51 = vld [vmem:[%s2556_s4 + $0x2] ss:$0 sm:$0xff] }
 0x11d   :  { %1397 = vmatpush3.msra.mxu0 %v1137_v31  ;;  %1598 = vpow2.f32 %v894_v57 }
 0x11e   :  { %1398 = vmatprep.subr.mxu0 %v1722_v0  ;;  %1600 = vpow2.f32 %v892_v6  ;;  %v1597_v5 = vpop.eup %1596 }
 0x11f   :  { %v942_v59 = vadd.f32 1.0, %v1597_v5  ;;  %v945_v43 = vmul.f32 -0.5, %v1597_v5  ;;  %v948_v11 = vand.u32 2147483647, %v1597_v5 }
 0x121   :  { %1602 = vlog2.f32 %v942_v59  ;;  %v946_v44 = vadd.f32 1.0, %v945_v43  ;;  %vm949_vm13 = vcmp.lt.f32.partialorder %v948_v11, 0.0004427343 }
 0x123   :  { %v947_v48 = vmul.f32 %v1597_v5, %v946_v44 }
 0x12a   :  { %v1599_v32 = vpop.eup %1598 }
 0x12b   :  { %v933_v15 = vadd.f32 1.0, %v1599_v32  ;;  %v1601_v53 = vpop.eup %1600  ;;  %v936_v36 = vmul.f32 -0.5, %v1599_v32  ;;  %v939_v61 = vand.u32 2147483647, %v1599_v32 }
 0x12c   :  { %v924_v8 = vadd.f32 1.0, %v1601_v53  ;;  %v927_v18 = vmul.f32 -0.5, %v1601_v53  ;;  %v930_v20 = vand.u32 2147483647, %v1601_v53 }
 0x12d   :  { %1604 = vlog2.f32 %v933_v15  ;;  %v937_v58 = vadd.f32 1.0, %v936_v36  ;;  %vm940_vm14 = vcmp.lt.f32.partialorder %v939_v61, 0.0004427343 }
 0x12e   :  { %1606 = vlog2.f32 %v924_v8  ;;  %v1603_v50 = vpop.eup %1602  ;;  %v928_v34 = vadd.f32 1.0, %v927_v18  ;;  %vm931_vm2 = vcmp.lt.f32.partialorder %v930_v20, 0.0004427343 }
 0x12f   :  { %v944_v1 = vmul.f32 0.6931472, %v1603_v50  ;;  %v938_v4 = vmul.f32 %v1599_v32, %v937_v58 }
 0x130   :  { %v929_v52 = vmul.f32 %v1601_v53, %v928_v34 }
 0x131   :  { %v950_v46 = vsel %vm949_vm13, %v947_v48, %v944_v1 }
 0x132   :  { %v1070_v19 = vsel %vm862_vm15, %v846_v35, %v950_v46 }
 0x133   :  { %v1103_v16 = vmul.f32 %v1087_v7, %v1070_v19 }
 0x135   :  { %v1136_v24 = vadd.f32 %v1120_v40, %v1103_v16 }
 0x137   :  { %1399 = vmatpush3.msra.mxu0 %v1136_v24 }
 0x138   :  { %1400 = vmatprep.subr.mxu0 %v1722_v0 }
 0x13a   :  { %v1605_v42 = vpop.eup %1604 }
 0x13b   :  { %v935_v25 = vmul.f32 0.6931472, %v1605_v42  ;;  %v1607_v17 = vpop.eup %1606 }
 0x13c   :  { %v926_v54 = vmul.f32 0.6931472, %v1607_v17 }
 0x13d   :  { %v941_v29 = vsel %vm940_vm14, %v938_v4, %v935_v25 }
 0x13e   :  { %v1069_v55 = vsel %vm861_vm1, %v845_v9, %v941_v29  ;;  %v932_v39 = vsel %vm931_vm2, %v929_v52, %v926_v54 }
 0x13f   :  { %v1102_v41 = vmul.f32 %v1086_v10, %v1069_v55  ;;  %v1068_v2 = vsel %vm860_vm3, %v844_v49, %v932_v39 }
 0x140   :  { %v1101_v23 = vmul.f32 %v1085_v26, %v1068_v2 }
 0x141   :  { %v1135_v62 = vadd.f32 %v1119_v22, %v1102_v41 }
 0x142   :  { %v1134_v30 = vadd.f32 %v1118_v21, %v1101_v23 }
 0x143   :  { %1401 = vmatpush3.msra.mxu0 %v1135_v62 }
 0x144   :  { %1402 = vmatprep.subr.mxu0 %v1722_v0 }
 0x145   :  { %1403 = vmatpush3.msra.mxu0 %v1134_v30 }
 0x155   :  { %v452_v63 = vpop.f32.mrf.mxu0 }
 0x156   :  { %v453_v56 = vadd.f32 %v1246_v60, %v452_v63 }
 0x157   :  { %v1336_v14 = vpop.f32.mrf.mxu0 }
 0x158   :  { %v456_v3 = vmax.f32 %v453_v56, 0.0 }
 0x15a   :  { %1370 = vmatmul.mubr.f32.vlgmr.msra.gmra.mxu1 %v456_v3 }
 0x21a   :  { %v838_v13 = vpop.f32.mrf.mxu1 }
 0x21b   :  { %v839_v37 = vadd.f32 %v1248_v12, %v838_v13 }
 0x21c   :  { %v1371_v27 = vpop.f32.mrf.mxu1 }
 0x21d   :  { %v842_v47 = vmax.f32 %v839_v37, 0.0 }
 0x21f   :  { %1405 = vmatmul.mubr.f32.vlgmr.msra.gmra.mxu0 %v842_v47 }
 0x2df   :  { %v1224_v31 = vpop.f32.mrf.mxu0 }
 0x2e0   :  { %v1225_v60 = vadd.f32 %v1250_v51, %v1224_v31 }
 0x2e1   :  { %v1406_v0 = vpop.f32.mrf.mxu0 }
 0x2e2   :  { %1228 = vst [vmem:[#allocation10] sm:$0xff] %v1225_v60 }
 0x2e3   :  { %1699 = shalt.err (!%p1696_p10)
}
 0x2e4   :  { %1238 = dma.vmem_to_hbm [thread:$0]  %s1236_s18, 128, %s2557_s5, [#allocation4]  }
 0x2e5   :  { %1714 = dma.done.wait [#allocation4], 128  }
 0x2e6   :  { %1715 = vsyncadd [#allocation4], 4294967168 }
 0x2e7   :  { %1242 = vsyncpa [#allocation3], 1 }
 0x2e8   :  { %1243 = vsyncpa [#allocation6], 1 }
 0x2e9   :  { %1244 = vsyncpa [#allocation9], 1 }
 0x2ea   :  { %1245 = vsyncpa [#allocation4], 1 }

</bundles_post_ra>
